<compile_context>
chip_gen: v7x
topology: tpu7x:2x2x1
jax: 0.10.0
libtpu: 0.0.40
codegen_flags: <defaults>
</compile_context>

<pallas_src>
import functools

import jax
import jax.numpy as jnp
from jax.experimental import pallas as pl
from jax.experimental.pallas import tpu as pltpu


# ----------------------------------------------------------------------------
# helpers
# ----------------------------------------------------------------------------
def _pad_amounts(kernel_size, dilation=1):
    if kernel_size % 2 == 0:
        pad_l = dilation * (kernel_size - 2) // 2 + 1
        pad_r = dilation * kernel_size // 2 + 1
    else:
        pad_l = dilation * (kernel_size - 1) // 2 + 1
        pad_r = dilation * (kernel_size - 1) // 2 + 1
    return pad_l, pad_r


def _zip_time_cf(even, odd):
    # channels-first: (..., C, L) pair -> (..., C, 2L) interleaved on time.
    *lead, C, L = even.shape
    return jnp.stack([even, odd], axis=-1).reshape(*lead, C, 2 * L)


def _zip_time_seq(even, odd):
    # channels-last: (..., L, C) pair -> (..., 2L, C) (reference path only).
    *lead, L, C = even.shape
    return jnp.stack([even, odd], axis=-2).reshape(*lead, 2 * L, C)


# ----------------------------------------------------------------------------
# Pallas kernel: one fused Interactor per (tree node, batch element)
# ----------------------------------------------------------------------------
def _level_kernel(xe_ref, xo_ref,
                  w1a_ref, b1a_ref, w2a_ref, b2a_ref,
                  w1b_ref, b1b_ref, w2b_ref, b2b_ref,
                  out_ref, *, kernel_size):
    """One SCINet Interactor for one (node, batch element).

    Layout: time on lanes, channels on sublanes.  The two coupled streams
    are stacked on the channel axis and processed by block-diagonal fused
    weights, so each pair of subnet convs is a single 2-D im2col matmul on
    the MXU (bf16 operands, f32 accumulation).
    """
    K1 = kernel_size
    K2 = 3
    pad_l, pad_r = _pad_amounts(K1)

    C = xe_ref.shape[2]
    Lh = xe_ref.shape[3]
    xe = xe_ref[...].reshape(C, Lh).astype(jnp.float32)        # (C, Lh)
    xo = xo_ref[...].reshape(C, Lh).astype(jnp.float32)

    def fused_subnet(z, w1_ref, b1_ref, w2_ref, b2_ref):
        # z: (2C, Lh) f32 -- two independent streams stacked on channels.
        c2 = z.shape[0]
        # ReplicationPad1d along time (lane axis).
        left = jnp.broadcast_to(z[:, 0:1], (c2, pad_l))
        right = jnp.broadcast_to(z[:, Lh - 1:Lh], (c2, pad_r))
        zp = jnp.concatenate([left, z, right], axis=1)         # (2C, Lpad)
        l1 = Lh + pad_l + pad_r - K1 + 1

        # Conv1d #1 as one im2col matmul (contraction dim = K1*2C).
        cols1 = jnp.concatenate([zp[:, k:k + l1] for k in range(K1)],
                                axis=0)                        # (K1*2C, L1)
        h = jnp.dot(w1_ref[0], cols1.astype(w1_ref.dtype),
                    preferred_element_type=jnp.float32)        # (2Ch, L1)
        h = h + b1_ref[0]                                      # (2Ch, 1) bias
        h = jnp.where(h > 0, h, 0.01 * h)                      # LeakyReLU(0.01)
        # TODO(synk): nn.Dropout is identity (eval-mode forward semantics).

        # Conv1d #2 (k=3) as one im2col matmul (contraction dim = 3*2Ch).
        l2 = l1 - K2 + 1
        cols2 = jnp.concatenate([h[:, k:k + l2] for k in range(K2)],
                                axis=0)                        # (K2*2Ch, L2)
        y = jnp.dot(w2_ref[0], cols2.astype(w2_ref.dtype),
                    preferred_element_type=jnp.float32)        # (2C, L2)
        y = y + b2_ref[0]
        return jnp.tanh(y)

    # phi/psi fused -> [phi(x_even) | psi(x_odd)] stacked on channels.
    z = jnp.concatenate([xe, xo], axis=0)                      # [xe | xo]
    zswap = jnp.concatenate([xo, xe], axis=0)                  # [xo | xe]
    g = fused_subnet(z, w1a_ref, b1a_ref, w2a_ref, b2a_ref)
    dc = zswap * jnp.exp(g)                                    # [d | c] in f32

    # U/P fused on [d | c] -> [U(d) | P(c)].
    up = fused_subnet(dc, w1b_ref, b1b_ref, w2b_ref, b2b_ref)

    even_out = dc[C:, :] + up[:C, :]                           # c + U(d)
    odd_out = dc[:C, :] - up[C:, :]                            # d - P(c)
    out = jnp.stack([even_out, odd_out], axis=0).astype(out_ref.dtype)
    out_ref[...] = out[None, :, None]                          # (1, 2, 1, C, Lh)


def interactor_level_pallas(xe, xo, fused_w, *, kernel_size):
    """All tree nodes of one level in a single pallas_call.

    xe, xo: (N, B, C, Lh) float32, channels-first, time on the lane axis.
    fused_w: 8 block-diagonal weights/biases, each with leading node axis N.
    Returns (N, 2, B, C, Lh): index 0 = even_update, index 1 = odd_update.
    """
    N, B, C, Lh = xe.shape

    data_spec = pl.BlockSpec((1, 1, C, Lh), lambda n, b: (n, b, 0, 0))
    out_spec = pl.BlockSpec((1, 2, 1, C, Lh), lambda n, b: (n, 0, b, 0, 0))
    # Weights are indexed by the node axis only, so they stay resident in
    # VMEM while the (fastest-varying) batch grid axis iterates.
    weight_specs = [
        pl.BlockSpec((1,) + tuple(w.shape[1:]), lambda n, b: (n, 0, 0))
        for w in fused_w
    ]

    kernel = functools.partial(_level_kernel, kernel_size=kernel_size)
    return pl.pallas_call(
        kernel,
        grid=(N, B),
        in_specs=[data_spec, data_spec] + weight_specs,
        out_specs=out_spec,
        out_shape=jax.ShapeDtypeStruct((N, 2, B, C, Lh), jnp.float32),
        compiler_params=pltpu.CompilerParams(
            dimension_semantics=("parallel", "parallel")),
    )(xe, xo, *fused_w)


# ----------------------------------------------------------------------------
# Host-side weight fusion (block-diagonal, im2col layout), stacked per level.
# Computed ONCE outside the jitted forward (review: hoist weight reshuffle).
# ----------------------------------------------------------------------------
def _fuse_conv_pair(wA, wB):
    """Block-diagonal im2col weight for two independent conv branches.

    wA, wB: (K, Cin, Cout).  Result (2*Cout, K*2*Cin) such that
    out[d, l] = sum_{k, j} W[d, k*2*Cin + j] * x_stacked[j, l + k],
    where the two branch inputs are stacked on the channel axis.
    """
    K, Cin, Cout = wA.shape
    z = jnp.zeros_like(wA)
    top = jnp.concatenate([wA, z], axis=2)             # branch-A inputs
    bot = jnp.concatenate([z, wB], axis=2)             # branch-B inputs
    blk = jnp.concatenate([top, bot], axis=1)          # (K, 2Cin, 2Cout)
    return jnp.transpose(blk, (2, 0, 1)).reshape(2 * Cout, K * 2 * Cin)


def _fuse_bias_pair(bA, bB):
    return jnp.concatenate([bA, bB]).reshape(-1, 1)    # (2*Cout, 1), f32


def _fuse_node_weights(node, weight_dtype):
    phi, psi, U, P = node["phi"], node["psi"], node["U"], node["P"]
    return (
        _fuse_conv_pair(phi[0], psi[0]).astype(weight_dtype),
        _fuse_bias_pair(phi[1], psi[1]),
        _fuse_conv_pair(phi[2], psi[2]).astype(weight_dtype),
        _fuse_bias_pair(phi[3], psi[3]),
        _fuse_conv_pair(U[0], P[0]).astype(weight_dtype),
        _fuse_bias_pair(U[1], P[1]),
        _fuse_conv_pair(U[2], P[2]).astype(weight_dtype),
        _fuse_bias_pair(U[3], P[3]),
    )


def _stack_level_weights(nodes, weight_dtype):
    per_node = [_fuse_node_weights(nd, weight_dtype) for nd in nodes]
    return tuple(jnp.stack([pn[i] for pn in per_node], axis=0)
                 for i in range(8))


def prepare_fused_levels(params, num_levels, weight_dtype=jnp.bfloat16):
    """Precompute per-level stacked, fused (bf16) weights.  Run once."""
    levels = []
    nodes = [params]
    for lvl in range(num_levels):
        levels.append(_stack_level_weights(nodes, weight_dtype))
        if lvl != num_levels - 1:
            children = []
            for nd in nodes:
                children.append(nd["even"])   # child 2i   = even branch
                children.append(nd["odd"])    # child 2i+1 = odd branch
            nodes = children
    return levels


# ----------------------------------------------------------------------------
# Tree driver: level-by-level (breadth-first), channels-first end-to-end
# ----------------------------------------------------------------------------
def encoder_tree_forward(x, fused_levels, *, kernel_size):
    """SCINet EncoderTree forward.  x: (B, T, C), T % 2**num_levels == 0."""
    num_levels = len(fused_levels)
    B, T, C = x.shape
    # TODO(synk): odd-length (uneven even/odd) splits are not supported; the
    # reference module appends the trailing even element in zip_up_the_pants.
    assert T % (2 ** num_levels) == 0, "T must be divisible by 2**num_levels"

    # Single transpose to channels-first; state stays (N, B, C, L) until the
    # final un-zip -- no per-level layout round trips through HBM.
    seqs = jnp.transpose(x, (0, 2, 1))[None].astype(jnp.float32)   # (1,B,C,T)
    results = None
    for lvl in range(num_levels):
        N = seqs.shape[0]
        Lh = seqs.shape[-1] // 2
        xe = seqs[..., 0::2]                           # lane-stride-2 slices
        xo = seqs[..., 1::2]
        combined = interactor_level_pallas(
            xe, xo, fused_levels[lvl], kernel_size=kernel_size)
        if lvl == num_levels - 1:
            results = combined                         # (N, 2, B, C, Lh)
        else:
            # Free contiguous reshape: children ordered [even, odd] per node.
            seqs = combined.reshape(2 * N, B, C, Lh)

    # Un-zip back up: parent_i = interleave(child_{2i}, child_{2i+1}).
    res = _zip_time_cf(results[:, 0], results[:, 1])   # (N, B, C, 2*Lh)
    while res.shape[0] > 1:
        res = _zip_time_cf(res[0::2], res[1::2])
    return jnp.transpose(res[0], (0, 2, 1))            # (B, T, C)


# ----------------------------------------------------------------------------
# Pure-JAX reference (non-fused, per-node recursion) for correctness checking
# ----------------------------------------------------------------------------
_HI = jax.lax.Precision.HIGHEST


def _ref_subnet(x, w1, b1, w2, b2, kernel_size):
    # x: (B, L, Cin) channels-last.
    pad_l, pad_r = _pad_amounts(kernel_size)
    B, L, Cin = x.shape
    xp = jnp.concatenate(
        [jnp.broadcast_to(x[:, :1, :], (B, pad_l, Cin)), x,
         jnp.broadcast_to(x[:, L - 1:, :], (B, pad_r, Cin))], axis=1)
    K1 = w1.shape[0]
    L1 = L + pad_l + pad_r - K1 + 1
    h = sum(jnp.einsum('blc,ch->blh', xp[:, k:k + L1, :], w1[k],
                       precision=_HI) for k in range(K1)) + b1
    h = jnp.where(h > 0, h, 0.01 * h)
    K2 = w2.shape[0]
    L2 = L1 - K2 + 1
    y = sum(jnp.einsum('blc,ch->blh', h[:, k:k + L2, :], w2[k],
                       precision=_HI) for k in range(K2)) + b2
    return jnp.tanh(y)


def _ref_interactor(x, node, kernel_size):
    xe, xo = x[:, ::2, :], x[:, 1::2, :]
    d = xo * jnp.exp(_ref_subnet(xe, *node["phi"], kernel_size))
    c = xe * jnp.exp(_ref_subnet(xo, *node["psi"], kernel_size))
    even = c + _ref_subnet(d, *node["U"], kernel_size)
    odd = d - _ref_subnet(c, *node["P"], kernel_size)
    return even, odd


def _ref_tree(x, node, level, kernel_size):
    even, odd = _ref_interactor(x, node, kernel_size)
    if level == 0:
        return _zip_time_seq(even, odd)
    return _zip_time_seq(
        _ref_tree(even, node["even"], level - 1, kernel_size),
        _ref_tree(odd, node["odd"], level - 1, kernel_size))


# ----------------------------------------------------------------------------
# Deterministic parameter initialization (matches module shapes, groups=1)
# ----------------------------------------------------------------------------
def init_subnet(key, in_planes, hidden_ch, kernel_size):
    k1, k2, k3, k4 = jax.random.split(key, 4)
    # Conv1d weights stored as (K, C_in, C_out); PyTorch uses (C_out, C_in, K).
    w1 = jax.random.normal(k1, (kernel_size, in_planes, hidden_ch),
                           jnp.float32) * 0.1
    b1 = jax.random.normal(k2, (hidden_ch,), jnp.float32) * 0.1
    w2 = jax.random.normal(k3, (3, hidden_ch, in_planes), jnp.float32) * 0.1
    b2 = jax.random.normal(k4, (in_planes,), jnp.float32) * 0.1
    return (w1, b1, w2, b2)


def init_tree(key, level, in_planes, hidden_ch, kernel_size):
    keys = jax.random.split(key, 6)
    node = {
        "phi": init_subnet(keys[0], in_planes, hidden_ch, kernel_size),
        "psi": init_subnet(keys[1], in_planes, hidden_ch, kernel_size),
        "U": init_subnet(keys[2], in_planes, hidden_ch, kernel_size),
        "P": init_subnet(keys[3], in_planes, hidden_ch, kernel_size),
    }
    if level != 0:
        node["even"] = init_tree(keys[4], level - 1, in_planes, hidden_ch,
                                 kernel_size)
        node["odd"] = init_tree(keys[5], level - 1, in_planes, hidden_ch,
                                kernel_size)
    return node


# ----------------------------------------------------------------------------
if __name__ == "__main__":
    # EncoderTree(in_planes=4, num_levels=2, kernel_size=5, dropout=0.5,
    #             groups=1, hidden_size=2, INN=True)
    B, T, C = 2, 16, 4                    # T divisible by 2**num_levels
    num_levels = 2
    kernel_size = 5
    hidden_size = 2
    hidden_ch = C * hidden_size

    key = jax.random.PRNGKey(0)
    kx, kp = jax.random.split(key)
    x = jax.random.normal(kx, (B, T, C), jnp.float32)
    params = init_tree(kp, num_levels - 1, C, hidden_ch, kernel_size)

    # Fused block-diagonal weights built once, outside the jitted forward.
    fused_levels = prepare_fused_levels(params, num_levels)

    fwd = jax.jit(functools.partial(encoder_tree_forward,
                                    kernel_size=kernel_size))
    out = fwd(x, fused_levels)
    jax.block_until_ready(out)

    assert out.shape == (B, T, C), out.shape
    assert bool(jnp.all(jnp.isfinite(out)))

    # Cross-check against a straightforward (non-fused, HIGHEST-precision)
    # pure-JAX reference.  Tolerance accounts for bf16 matmul operands.
    ref = _ref_tree(x, params, num_levels - 1, kernel_size)
    err = float(jnp.max(jnp.abs(out - ref)))
    assert err < 3e-2, f"max abs error vs reference: {err}"

    print("KERNEL_OK")
</pallas_src>

<mosaic_0001>
module attributes {stable_mosaic.version = 11 : i64} {
  func.func @_level_kernel(%arg0: i32, %arg1: i32, %arg2: memref<1x1x4x8xf32, #tpu.memory_space<vmem>>, %arg3: memref<1x1x4x8xf32, #tpu.memory_space<vmem>>, %arg4: memref<1x16x40xbf16, #tpu.memory_space<vmem>>, %arg5: memref<1x16x1xf32, #tpu.memory_space<vmem>>, %arg6: memref<1x8x48xbf16, #tpu.memory_space<vmem>>, %arg7: memref<1x8x1xf32, #tpu.memory_space<vmem>>, %arg8: memref<1x16x40xbf16, #tpu.memory_space<vmem>>, %arg9: memref<1x16x1xf32, #tpu.memory_space<vmem>>, %arg10: memref<1x8x48xbf16, #tpu.memory_space<vmem>>, %arg11: memref<1x8x1xf32, #tpu.memory_space<vmem>>, %arg12: memref<1x2x1x4x8xf32, #tpu.memory_space<vmem>>) attributes {dimension_semantics = [#tpu.dimension_semantics<parallel>, #tpu.dimension_semantics<parallel>], iteration_bounds = array<i64: 1, 2>, scalar_prefetch = 0 : i64, scratch_operands = 0 : i64, tpu.core_type = #tpu.core_type<tc>, window_params = [{transform_indices = @transform_0, window_bounds = array<i64: 1, 1, 4, 8>}, {transform_indices = @transform_1, window_bounds = array<i64: 1, 1, 4, 8>}, {transform_indices = @transform_2, window_bounds = array<i64: 1, 16, 40>}, {transform_indices = @transform_3, window_bounds = array<i64: 1, 16, 1>}, {transform_indices = @transform_4, window_bounds = array<i64: 1, 8, 48>}, {transform_indices = @transform_5, window_bounds = array<i64: 1, 8, 1>}, {transform_indices = @transform_6, window_bounds = array<i64: 1, 16, 40>}, {transform_indices = @transform_7, window_bounds = array<i64: 1, 16, 1>}, {transform_indices = @transform_8, window_bounds = array<i64: 1, 8, 48>}, {transform_indices = @transform_9, window_bounds = array<i64: 1, 8, 1>}, {transform_indices = @transform_10, window_bounds = array<i64: 1, 2, 1, 4, 8>}]} {
    %c0 = arith.constant 0 : index
    %c0_0 = arith.constant 0 : index
    %c0_1 = arith.constant 0 : index
    %c0_2 = arith.constant 0 : index
    %0 = vector.load %arg2[%c0, %c0_0, %c0_1, %c0_2] : memref<1x1x4x8xf32, #tpu.memory_space<vmem>>, vector<1x1x4x8xf32>
    %1 = vector.shape_cast %0 : vector<1x1x4x8xf32> to vector<4x8xf32>
    %c0_3 = arith.constant 0 : index
    %c0_4 = arith.constant 0 : index
    %c0_5 = arith.constant 0 : index
    %c0_6 = arith.constant 0 : index
    %2 = vector.load %arg3[%c0_3, %c0_4, %c0_5, %c0_6] : memref<1x1x4x8xf32, #tpu.memory_space<vmem>>, vector<1x1x4x8xf32>
    %3 = vector.shape_cast %2 : vector<1x1x4x8xf32> to vector<4x8xf32>
    %4 = tpu.concatenate %1, %3 in 0 : vector<4x8xf32>, vector<4x8xf32> -> vector<8x8xf32>
    %5 = tpu.concatenate %3, %1 in 0 : vector<4x8xf32>, vector<4x8xf32> -> vector<8x8xf32>
    %6 = vector.extract_strided_slice %4 {offsets = [0, 0], sizes = [8, 1], strides = [1, 1]} : vector<8x8xf32> to vector<8x1xf32>
    %7 = vector.shape_cast %6 : vector<8x1xf32> to vector<8x1xf32>
    %8 = vector.broadcast %7 : vector<8x1xf32> to vector<8x3xf32>
    %9 = vector.extract_strided_slice %4 {offsets = [0, 7], sizes = [8, 1], strides = [1, 1]} : vector<8x8xf32> to vector<8x1xf32>
    %10 = vector.shape_cast %9 : vector<8x1xf32> to vector<8x1xf32>
    %11 = vector.broadcast %10 : vector<8x1xf32> to vector<8x3xf32>
    %12 = tpu.concatenate %8, %4, %11 in 1 : vector<8x3xf32>, vector<8x8xf32>, vector<8x3xf32> -> vector<8x14xf32>
    %13 = vector.extract_strided_slice %12 {offsets = [0, 0], sizes = [8, 10], strides = [1, 1]} : vector<8x14xf32> to vector<8x10xf32>
    %14 = vector.extract_strided_slice %12 {offsets = [0, 1], sizes = [8, 10], strides = [1, 1]} : vector<8x14xf32> to vector<8x10xf32>
    %15 = vector.extract_strided_slice %12 {offsets = [0, 2], sizes = [8, 10], strides = [1, 1]} : vector<8x14xf32> to vector<8x10xf32>
    %16 = vector.extract_strided_slice %12 {offsets = [0, 3], sizes = [8, 10], strides = [1, 1]} : vector<8x14xf32> to vector<8x10xf32>
    %17 = vector.extract_strided_slice %12 {offsets = [0, 4], sizes = [8, 10], strides = [1, 1]} : vector<8x14xf32> to vector<8x10xf32>
    %18 = tpu.concatenate %13, %14, %15, %16, %17 in 0 : vector<8x10xf32>, vector<8x10xf32>, vector<8x10xf32>, vector<8x10xf32>, vector<8x10xf32> -> vector<40x10xf32>
    %c0_7 = arith.constant 0 : index
    %c0_8 = arith.constant 0 : index
    %c0_9 = arith.constant 0 : index
    %19 = vector.load %arg4[%c0_7, %c0_8, %c0_9] : memref<1x16x40xbf16, #tpu.memory_space<vmem>>, vector<1x16x40xbf16>
    %20 = vector.shape_cast %19 : vector<1x16x40xbf16> to vector<16x40xbf16>
    %21 = arith.truncf %18 : vector<40x10xf32> to vector<40x10xbf16>
    %cst = arith.constant dense<0.000000e+00> : vector<16x10xf32>
    %22 = tpu.matmul %20, %21, %cst {dimension_numbers = #tpu.dot_dimension_numbers<[1], [0], [0], [1], [0, 0, 1, 1], [], []>} : vector<16x40xbf16>, vector<40x10xbf16>, vector<16x10xf32> -> vector<16x10xf32>
    %c0_10 = arith.constant 0 : index
    %c0_11 = arith.constant 0 : index
    %c0_12 = arith.constant 0 : index
    %23 = vector.load %arg5[%c0_10, %c0_11, %c0_12] : memref<1x16x1xf32, #tpu.memory_space<vmem>>, vector<1x16x1xf32>
    %24 = vector.shape_cast %23 : vector<1x16x1xf32> to vector<16x1xf32>
    %25 = vector.broadcast %24 : vector<16x1xf32> to vector<16x10xf32>
    %26 = arith.addf %22, %25 : vector<16x10xf32>
    %cst_13 = arith.constant 0.000000e+00 : f32
    %27 = vector.broadcast %cst_13 : f32 to vector<16x10xf32>
    %28 = arith.cmpf ogt, %26, %27 : vector<16x10xf32>
    %cst_14 = arith.constant 0.00999999977 : f32
    %29 = vector.broadcast %cst_14 : f32 to vector<16x10xf32>
    %30 = arith.mulf %29, %26 : vector<16x10xf32>
    %31 = arith.select %28, %26, %30 : vector<16x10xi1>, vector<16x10xf32>
    %32 = vector.extract_strided_slice %31 {offsets = [0, 0], sizes = [16, 8], strides = [1, 1]} : vector<16x10xf32> to vector<16x8xf32>
    %33 = vector.extract_strided_slice %31 {offsets = [0, 1], sizes = [16, 8], strides = [1, 1]} : vector<16x10xf32> to vector<16x8xf32>
    %34 = vector.extract_strided_slice %31 {offsets = [0, 2], sizes = [16, 8], strides = [1, 1]} : vector<16x10xf32> to vector<16x8xf32>
    %35 = tpu.concatenate %32, %33, %34 in 0 : vector<16x8xf32>, vector<16x8xf32>, vector<16x8xf32> -> vector<48x8xf32>
    %c0_15 = arith.constant 0 : index
    %c0_16 = arith.constant 0 : index
    %c0_17 = arith.constant 0 : index
    %36 = vector.load %arg6[%c0_15, %c0_16, %c0_17] : memref<1x8x48xbf16, #tpu.memory_space<vmem>>, vector<1x8x48xbf16>
    %37 = vector.shape_cast %36 : vector<1x8x48xbf16> to vector<8x48xbf16>
    %38 = arith.truncf %35 : vector<48x8xf32> to vector<48x8xbf16>
    %cst_18 = arith.constant dense<0.000000e+00> : vector<8x8xf32>
    %39 = tpu.matmul %37, %38, %cst_18 {dimension_numbers = #tpu.dot_dimension_numbers<[1], [0], [0], [1], [0, 0, 1, 1], [], []>} : vector<8x48xbf16>, vector<48x8xbf16>, vector<8x8xf32> -> vector<8x8xf32>
    %c0_19 = arith.constant 0 : index
    %c0_20 = arith.constant 0 : index
    %c0_21 = arith.constant 0 : index
    %40 = vector.load %arg7[%c0_19, %c0_20, %c0_21] : memref<1x8x1xf32, #tpu.memory_space<vmem>>, vector<1x8x1xf32>
    %41 = vector.shape_cast %40 : vector<1x8x1xf32> to vector<8x1xf32>
    %42 = vector.broadcast %41 : vector<8x1xf32> to vector<8x8xf32>
    %43 = arith.addf %39, %42 : vector<8x8xf32>
    %44 = math.tanh %43 : vector<8x8xf32>
    %45 = math.exp %44 : vector<8x8xf32>
    %46 = arith.mulf %5, %45 : vector<8x8xf32>
    %47 = vector.extract_strided_slice %46 {offsets = [0, 0], sizes = [8, 1], strides = [1, 1]} : vector<8x8xf32> to vector<8x1xf32>
    %48 = vector.shape_cast %47 : vector<8x1xf32> to vector<8x1xf32>
    %49 = vector.broadcast %48 : vector<8x1xf32> to vector<8x3xf32>
    %50 = vector.extract_strided_slice %46 {offsets = [0, 7], sizes = [8, 1], strides = [1, 1]} : vector<8x8xf32> to vector<8x1xf32>
    %51 = vector.shape_cast %50 : vector<8x1xf32> to vector<8x1xf32>
    %52 = vector.broadcast %51 : vector<8x1xf32> to vector<8x3xf32>
    %53 = tpu.concatenate %49, %46, %52 in 1 : vector<8x3xf32>, vector<8x8xf32>, vector<8x3xf32> -> vector<8x14xf32>
    %54 = vector.extract_strided_slice %53 {offsets = [0, 0], sizes = [8, 10], strides = [1, 1]} : vector<8x14xf32> to vector<8x10xf32>
    %55 = vector.extract_strided_slice %53 {offsets = [0, 1], sizes = [8, 10], strides = [1, 1]} : vector<8x14xf32> to vector<8x10xf32>
    %56 = vector.extract_strided_slice %53 {offsets = [0, 2], sizes = [8, 10], strides = [1, 1]} : vector<8x14xf32> to vector<8x10xf32>
    %57 = vector.extract_strided_slice %53 {offsets = [0, 3], sizes = [8, 10], strides = [1, 1]} : vector<8x14xf32> to vector<8x10xf32>
    %58 = vector.extract_strided_slice %53 {offsets = [0, 4], sizes = [8, 10], strides = [1, 1]} : vector<8x14xf32> to vector<8x10xf32>
    %59 = tpu.concatenate %54, %55, %56, %57, %58 in 0 : vector<8x10xf32>, vector<8x10xf32>, vector<8x10xf32>, vector<8x10xf32>, vector<8x10xf32> -> vector<40x10xf32>
    %c0_22 = arith.constant 0 : index
    %c0_23 = arith.constant 0 : index
    %c0_24 = arith.constant 0 : index
    %60 = vector.load %arg8[%c0_22, %c0_23, %c0_24] : memref<1x16x40xbf16, #tpu.memory_space<vmem>>, vector<1x16x40xbf16>
    %61 = vector.shape_cast %60 : vector<1x16x40xbf16> to vector<16x40xbf16>
    %62 = arith.truncf %59 : vector<40x10xf32> to vector<40x10xbf16>
    %cst_25 = arith.constant dense<0.000000e+00> : vector<16x10xf32>
    %63 = tpu.matmul %61, %62, %cst_25 {dimension_numbers = #tpu.dot_dimension_numbers<[1], [0], [0], [1], [0, 0, 1, 1], [], []>} : vector<16x40xbf16>, vector<40x10xbf16>, vector<16x10xf32> -> vector<16x10xf32>
    %c0_26 = arith.constant 0 : index
    %c0_27 = arith.constant 0 : index
    %c0_28 = arith.constant 0 : index
    %64 = vector.load %arg9[%c0_26, %c0_27, %c0_28] : memref<1x16x1xf32, #tpu.memory_space<vmem>>, vector<1x16x1xf32>
    %65 = vector.shape_cast %64 : vector<1x16x1xf32> to vector<16x1xf32>
    %66 = vector.broadcast %65 : vector<16x1xf32> to vector<16x10xf32>
    %67 = arith.addf %63, %66 : vector<16x10xf32>
    %cst_29 = arith.constant 0.000000e+00 : f32
    %68 = vector.broadcast %cst_29 : f32 to vector<16x10xf32>
    %69 = arith.cmpf ogt, %67, %68 : vector<16x10xf32>
    %cst_30 = arith.constant 0.00999999977 : f32
    %70 = vector.broadcast %cst_30 : f32 to vector<16x10xf32>
    %71 = arith.mulf %70, %67 : vector<16x10xf32>
    %72 = arith.select %69, %67, %71 : vector<16x10xi1>, vector<16x10xf32>
    %73 = vector.extract_strided_slice %72 {offsets = [0, 0], sizes = [16, 8], strides = [1, 1]} : vector<16x10xf32> to vector<16x8xf32>
    %74 = vector.extract_strided_slice %72 {offsets = [0, 1], sizes = [16, 8], strides = [1, 1]} : vector<16x10xf32> to vector<16x8xf32>
    %75 = vector.extract_strided_slice %72 {offsets = [0, 2], sizes = [16, 8], strides = [1, 1]} : vector<16x10xf32> to vector<16x8xf32>
    %76 = tpu.concatenate %73, %74, %75 in 0 : vector<16x8xf32>, vector<16x8xf32>, vector<16x8xf32> -> vector<48x8xf32>
    %c0_31 = arith.constant 0 : index
    %c0_32 = arith.constant 0 : index
    %c0_33 = arith.constant 0 : index
    %77 = vector.load %arg10[%c0_31, %c0_32, %c0_33] : memref<1x8x48xbf16, #tpu.memory_space<vmem>>, vector<1x8x48xbf16>
    %78 = vector.shape_cast %77 : vector<1x8x48xbf16> to vector<8x48xbf16>
    %79 = arith.truncf %76 : vector<48x8xf32> to vector<48x8xbf16>
    %cst_34 = arith.constant dense<0.000000e+00> : vector<8x8xf32>
    %80 = tpu.matmul %78, %79, %cst_34 {dimension_numbers = #tpu.dot_dimension_numbers<[1], [0], [0], [1], [0, 0, 1, 1], [], []>} : vector<8x48xbf16>, vector<48x8xbf16>, vector<8x8xf32> -> vector<8x8xf32>
    %c0_35 = arith.constant 0 : index
    %c0_36 = arith.constant 0 : index
    %c0_37 = arith.constant 0 : index
    %81 = vector.load %arg11[%c0_35, %c0_36, %c0_37] : memref<1x8x1xf32, #tpu.memory_space<vmem>>, vector<1x8x1xf32>
    %82 = vector.shape_cast %81 : vector<1x8x1xf32> to vector<8x1xf32>
    %83 = vector.broadcast %82 : vector<8x1xf32> to vector<8x8xf32>
    %84 = arith.addf %80, %83 : vector<8x8xf32>
    %85 = math.tanh %84 : vector<8x8xf32>
    %86 = vector.extract_strided_slice %46 {offsets = [4, 0], sizes = [4, 8], strides = [1, 1]} : vector<8x8xf32> to vector<4x8xf32>
    %87 = vector.extract_strided_slice %85 {offsets = [0, 0], sizes = [4, 8], strides = [1, 1]} : vector<8x8xf32> to vector<4x8xf32>
    %88 = arith.addf %86, %87 : vector<4x8xf32>
    %89 = vector.extract_strided_slice %46 {offsets = [0, 0], sizes = [4, 8], strides = [1, 1]} : vector<8x8xf32> to vector<4x8xf32>
    %90 = vector.extract_strided_slice %85 {offsets = [4, 0], sizes = [4, 8], strides = [1, 1]} : vector<8x8xf32> to vector<4x8xf32>
    %91 = arith.subf %89, %90 : vector<4x8xf32>
    %92 = vector.shape_cast %88 : vector<4x8xf32> to vector<1x4x8xf32>
    %93 = vector.shape_cast %91 : vector<4x8xf32> to vector<1x4x8xf32>
    %94 = tpu.concatenate %92, %93 in 0 : vector<1x4x8xf32>, vector<1x4x8xf32> -> vector<2x4x8xf32>
    %95 = vector.shape_cast %94 : vector<2x4x8xf32> to vector<1x2x1x4x8xf32>
    %c0_38 = arith.constant 0 : index
    %c0_39 = arith.constant 0 : index
    %c0_40 = arith.constant 0 : index
    %c0_41 = arith.constant 0 : index
    %c0_42 = arith.constant 0 : index
    %96 = vector.load %arg12[%c0_38, %c0_39, %c0_40, %c0_41, %c0_42] : memref<1x2x1x4x8xf32, #tpu.memory_space<vmem>>, vector<1x2x1x4x8xf32>
    tpu.vector_store %arg12[%c0_38, %c0_39, %c0_40, %c0_41, %c0_42], %95 {strides = array<i32>} : memref<1x2x1x4x8xf32, #tpu.memory_space<vmem>>, vector<1x2x1x4x8xf32>,
    return
  }
  func.func @transform_0(%arg0: i32, %arg1: i32) -> (i32, i32, i32, i32) {
    %c0_i32 = arith.constant 0 : i32
    %c0_i32_0 = arith.constant 0 : i32
    %c0_i32_1 = arith.constant 0 : i32
    return %arg0, %arg1, %c0_i32, %c0_i32_0 : i32, i32, i32, i32
  }
  func.func @transform_1(%arg0: i32, %arg1: i32) -> (i32, i32, i32, i32) {
    %c0_i32 = arith.constant 0 : i32
    %c0_i32_0 = arith.constant 0 : i32
    %c0_i32_1 = arith.constant 0 : i32
    return %arg0, %arg1, %c0_i32, %c0_i32_0 : i32, i32, i32, i32
  }
  func.func @transform_2(%arg0: i32, %arg1: i32) -> (i32, i32, i32) {
    %c0_i32 = arith.constant 0 : i32
    %c0_i32_0 = arith.constant 0 : i32
    %c0_i32_1 = arith.constant 0 : i32
    return %arg0, %c0_i32, %c0_i32_0 : i32, i32, i32
  }
  func.func @transform_3(%arg0: i32, %arg1: i32) -> (i32, i32, i32) {
    %c0_i32 = arith.constant 0 : i32
    %c0_i32_0 = arith.constant 0 : i32
    %c0_i32_1 = arith.constant 0 : i32
    return %arg0, %c0_i32, %c0_i32_0 : i32, i32, i32
  }
  func.func @transform_4(%arg0: i32, %arg1: i32) -> (i32, i32, i32) {
    %c0_i32 = arith.constant 0 : i32
    %c0_i32_0 = arith.constant 0 : i32
    %c0_i32_1 = arith.constant 0 : i32
    return %arg0, %c0_i32, %c0_i32_0 : i32, i32, i32
  }
  func.func @transform_5(%arg0: i32, %arg1: i32) -> (i32, i32, i32) {
    %c0_i32 = arith.constant 0 : i32
    %c0_i32_0 = arith.constant 0 : i32
    %c0_i32_1 = arith.constant 0 : i32
    return %arg0, %c0_i32, %c0_i32_0 : i32, i32, i32
  }
  func.func @transform_6(%arg0: i32, %arg1: i32) -> (i32, i32, i32) {
    %c0_i32 = arith.constant 0 : i32
    %c0_i32_0 = arith.constant 0 : i32
    %c0_i32_1 = arith.constant 0 : i32
    return %arg0, %c0_i32, %c0_i32_0 : i32, i32, i32
  }
  func.func @transform_7(%arg0: i32, %arg1: i32) -> (i32, i32, i32) {
    %c0_i32 = arith.constant 0 : i32
    %c0_i32_0 = arith.constant 0 : i32
    %c0_i32_1 = arith.constant 0 : i32
    return %arg0, %c0_i32, %c0_i32_0 : i32, i32, i32
  }
  func.func @transform_8(%arg0: i32, %arg1: i32) -> (i32, i32, i32) {
    %c0_i32 = arith.constant 0 : i32
    %c0_i32_0 = arith.constant 0 : i32
    %c0_i32_1 = arith.constant 0 : i32
    return %arg0, %c0_i32, %c0_i32_0 : i32, i32, i32
  }
  func.func @transform_9(%arg0: i32, %arg1: i32) -> (i32, i32, i32) {
    %c0_i32 = arith.constant 0 : i32
    %c0_i32_0 = arith.constant 0 : i32
    %c0_i32_1 = arith.constant 0 : i32
    return %arg0, %c0_i32, %c0_i32_0 : i32, i32, i32
  }
  func.func @transform_10(%arg0: i32, %arg1: i32) -> (i32, i32, i32, i32, i32) {
    %c0_i32 = arith.constant 0 : i32
    %c0_i32_0 = arith.constant 0 : i32
    %c0_i32_1 = arith.constant 0 : i32
    %c0_i32_2 = arith.constant 0 : i32
    return %arg0, %c0_i32, %arg1, %c0_i32_0, %c0_i32_1 : i32, i32, i32, i32, i32
  }
}

module attributes {stable_mosaic.version = 11 : i64} {
  func.func @_level_kernel(%arg0: i32, %arg1: i32, %arg2: memref<1x1x4x4xf32, #tpu.memory_space<vmem>>, %arg3: memref<1x1x4x4xf32, #tpu.memory_space<vmem>>, %arg4: memref<1x16x40xbf16, #tpu.memory_space<vmem>>, %arg5: memref<1x16x1xf32, #tpu.memory_space<vmem>>, %arg6: memref<1x8x48xbf16, #tpu.memory_space<vmem>>, %arg7: memref<1x8x1xf32, #tpu.memory_space<vmem>>, %arg8: memref<1x16x40xbf16, #tpu.memory_space<vmem>>, %arg9: memref<1x16x1xf32, #tpu.memory_space<vmem>>, %arg10: memref<1x8x48xbf16, #tpu.memory_space<vmem>>, %arg11: memref<1x8x1xf32, #tpu.memory_space<vmem>>, %arg12: memref<1x2x1x4x4xf32, #tpu.memory_space<vmem>>) attributes {dimension_semantics = [#tpu.dimension_semantics<parallel>, #tpu.dimension_semantics<parallel>], iteration_bounds = array<i64: 2, 2>, scalar_prefetch = 0 : i64, scratch_operands = 0 : i64, tpu.core_type = #tpu.core_type<tc>, window_params = [{transform_indices = @transform_0, window_bounds = array<i64: 1, 1, 4, 4>}, {transform_indices = @transform_1, window_bounds = array<i64: 1, 1, 4, 4>}, {transform_indices = @transform_2, window_bounds = array<i64: 1, 16, 40>}, {transform_indices = @transform_3, window_bounds = array<i64: 1, 16, 1>}, {transform_indices = @transform_4, window_bounds = array<i64: 1, 8, 48>}, {transform_indices = @transform_5, window_bounds = array<i64: 1, 8, 1>}, {transform_indices = @transform_6, window_bounds = array<i64: 1, 16, 40>}, {transform_indices = @transform_7, window_bounds = array<i64: 1, 16, 1>}, {transform_indices = @transform_8, window_bounds = array<i64: 1, 8, 48>}, {transform_indices = @transform_9, window_bounds = array<i64: 1, 8, 1>}, {transform_indices = @transform_10, window_bounds = array<i64: 1, 2, 1, 4, 4>}]} {
    %c0 = arith.constant 0 : index
    %c0_0 = arith.constant 0 : index
    %c0_1 = arith.constant 0 : index
    %c0_2 = arith.constant 0 : index
    %0 = vector.load %arg2[%c0, %c0_0, %c0_1, %c0_2] : memref<1x1x4x4xf32, #tpu.memory_space<vmem>>, vector<1x1x4x4xf32>
    %1 = vector.shape_cast %0 : vector<1x1x4x4xf32> to vector<4x4xf32>
    %c0_3 = arith.constant 0 : index
    %c0_4 = arith.constant 0 : index
    %c0_5 = arith.constant 0 : index
    %c0_6 = arith.constant 0 : index
    %2 = vector.load %arg3[%c0_3, %c0_4, %c0_5, %c0_6] : memref<1x1x4x4xf32, #tpu.memory_space<vmem>>, vector<1x1x4x4xf32>
    %3 = vector.shape_cast %2 : vector<1x1x4x4xf32> to vector<4x4xf32>
    %4 = tpu.concatenate %1, %3 in 0 : vector<4x4xf32>, vector<4x4xf32> -> vector<8x4xf32>
    %5 = tpu.concatenate %3, %1 in 0 : vector<4x4xf32>, vector<4x4xf32> -> vector<8x4xf32>
    %6 = vector.extract_strided_slice %4 {offsets = [0, 0], sizes = [8, 1], strides = [1, 1]} : vector<8x4xf32> to vector<8x1xf32>
    %7 = vector.shape_cast %6 : vector<8x1xf32> to vector<8x1xf32>
    %8 = vector.broadcast %7 : vector<8x1xf32> to vector<8x3xf32>
    %9 = vector.extract_strided_slice %4 {offsets = [0, 3], sizes = [8, 1], strides = [1, 1]} : vector<8x4xf32> to vector<8x1xf32>
    %10 = vector.shape_cast %9 : vector<8x1xf32> to vector<8x1xf32>
    %11 = vector.broadcast %10 : vector<8x1xf32> to vector<8x3xf32>
    %12 = tpu.concatenate %8, %4, %11 in 1 : vector<8x3xf32>, vector<8x4xf32>, vector<8x3xf32> -> vector<8x10xf32>
    %13 = vector.extract_strided_slice %12 {offsets = [0, 0], sizes = [8, 6], strides = [1, 1]} : vector<8x10xf32> to vector<8x6xf32>
    %14 = vector.extract_strided_slice %12 {offsets = [0, 1], sizes = [8, 6], strides = [1, 1]} : vector<8x10xf32> to vector<8x6xf32>
    %15 = vector.extract_strided_slice %12 {offsets = [0, 2], sizes = [8, 6], strides = [1, 1]} : vector<8x10xf32> to vector<8x6xf32>
    %16 = vector.extract_strided_slice %12 {offsets = [0, 3], sizes = [8, 6], strides = [1, 1]} : vector<8x10xf32> to vector<8x6xf32>
    %17 = vector.extract_strided_slice %12 {offsets = [0, 4], sizes = [8, 6], strides = [1, 1]} : vector<8x10xf32> to vector<8x6xf32>
    %18 = tpu.concatenate %13, %14, %15, %16, %17 in 0 : vector<8x6xf32>, vector<8x6xf32>, vector<8x6xf32>, vector<8x6xf32>, vector<8x6xf32> -> vector<40x6xf32>
    %c0_7 = arith.constant 0 : index
    %c0_8 = arith.constant 0 : index
    %c0_9 = arith.constant 0 : index
    %19 = vector.load %arg4[%c0_7, %c0_8, %c0_9] : memref<1x16x40xbf16, #tpu.memory_space<vmem>>, vector<1x16x40xbf16>
    %20 = vector.shape_cast %19 : vector<1x16x40xbf16> to vector<16x40xbf16>
    %21 = arith.truncf %18 : vector<40x6xf32> to vector<40x6xbf16>
    %cst = arith.constant dense<0.000000e+00> : vector<16x6xf32>
    %22 = tpu.matmul %20, %21, %cst {dimension_numbers = #tpu.dot_dimension_numbers<[1], [0], [0], [1], [0, 0, 1, 1], [], []>} : vector<16x40xbf16>, vector<40x6xbf16>, vector<16x6xf32> -> vector<16x6xf32>
    %c0_10 = arith.constant 0 : index
    %c0_11 = arith.constant 0 : index
    %c0_12 = arith.constant 0 : index
    %23 = vector.load %arg5[%c0_10, %c0_11, %c0_12] : memref<1x16x1xf32, #tpu.memory_space<vmem>>, vector<1x16x1xf32>
    %24 = vector.shape_cast %23 : vector<1x16x1xf32> to vector<16x1xf32>
    %25 = vector.broadcast %24 : vector<16x1xf32> to vector<16x6xf32>
    %26 = arith.addf %22, %25 : vector<16x6xf32>
    %cst_13 = arith.constant 0.000000e+00 : f32
    %27 = vector.broadcast %cst_13 : f32 to vector<16x6xf32>
    %28 = arith.cmpf ogt, %26, %27 : vector<16x6xf32>
    %cst_14 = arith.constant 0.00999999977 : f32
    %29 = vector.broadcast %cst_14 : f32 to vector<16x6xf32>
    %30 = arith.mulf %29, %26 : vector<16x6xf32>
    %31 = arith.select %28, %26, %30 : vector<16x6xi1>, vector<16x6xf32>
    %32 = vector.extract_strided_slice %31 {offsets = [0, 0], sizes = [16, 4], strides = [1, 1]} : vector<16x6xf32> to vector<16x4xf32>
    %33 = vector.extract_strided_slice %31 {offsets = [0, 1], sizes = [16, 4], strides = [1, 1]} : vector<16x6xf32> to vector<16x4xf32>
    %34 = vector.extract_strided_slice %31 {offsets = [0, 2], sizes = [16, 4], strides = [1, 1]} : vector<16x6xf32> to vector<16x4xf32>
    %35 = tpu.concatenate %32, %33, %34 in 0 : vector<16x4xf32>, vector<16x4xf32>, vector<16x4xf32> -> vector<48x4xf32>
    %c0_15 = arith.constant 0 : index
    %c0_16 = arith.constant 0 : index
    %c0_17 = arith.constant 0 : index
    %36 = vector.load %arg6[%c0_15, %c0_16, %c0_17] : memref<1x8x48xbf16, #tpu.memory_space<vmem>>, vector<1x8x48xbf16>
    %37 = vector.shape_cast %36 : vector<1x8x48xbf16> to vector<8x48xbf16>
    %38 = arith.truncf %35 : vector<48x4xf32> to vector<48x4xbf16>
    %cst_18 = arith.constant dense<0.000000e+00> : vector<8x4xf32>
    %39 = tpu.matmul %37, %38, %cst_18 {dimension_numbers = #tpu.dot_dimension_numbers<[1], [0], [0], [1], [0, 0, 1, 1], [], []>} : vector<8x48xbf16>, vector<48x4xbf16>, vector<8x4xf32> -> vector<8x4xf32>
    %c0_19 = arith.constant 0 : index
    %c0_20 = arith.constant 0 : index
    %c0_21 = arith.constant 0 : index
    %40 = vector.load %arg7[%c0_19, %c0_20, %c0_21] : memref<1x8x1xf32, #tpu.memory_space<vmem>>, vector<1x8x1xf32>
    %41 = vector.shape_cast %40 : vector<1x8x1xf32> to vector<8x1xf32>
    %42 = vector.broadcast %41 : vector<8x1xf32> to vector<8x4xf32>
    %43 = arith.addf %39, %42 : vector<8x4xf32>
    %44 = math.tanh %43 : vector<8x4xf32>
    %45 = math.exp %44 : vector<8x4xf32>
    %46 = arith.mulf %5, %45 : vector<8x4xf32>
    %47 = vector.extract_strided_slice %46 {offsets = [0, 0], sizes = [8, 1], strides = [1, 1]} : vector<8x4xf32> to vector<8x1xf32>
    %48 = vector.shape_cast %47 : vector<8x1xf32> to vector<8x1xf32>
    %49 = vector.broadcast %48 : vector<8x1xf32> to vector<8x3xf32>
    %50 = vector.extract_strided_slice %46 {offsets = [0, 3], sizes = [8, 1], strides = [1, 1]} : vector<8x4xf32> to vector<8x1xf32>
    %51 = vector.shape_cast %50 : vector<8x1xf32> to vector<8x1xf32>
    %52 = vector.broadcast %51 : vector<8x1xf32> to vector<8x3xf32>
    %53 = tpu.concatenate %49, %46, %52 in 1 : vector<8x3xf32>, vector<8x4xf32>, vector<8x3xf32> -> vector<8x10xf32>
    %54 = vector.extract_strided_slice %53 {offsets = [0, 0], sizes = [8, 6], strides = [1, 1]} : vector<8x10xf32> to vector<8x6xf32>
    %55 = vector.extract_strided_slice %53 {offsets = [0, 1], sizes = [8, 6], strides = [1, 1]} : vector<8x10xf32> to vector<8x6xf32>
    %56 = vector.extract_strided_slice %53 {offsets = [0, 2], sizes = [8, 6], strides = [1, 1]} : vector<8x10xf32> to vector<8x6xf32>
    %57 = vector.extract_strided_slice %53 {offsets = [0, 3], sizes = [8, 6], strides = [1, 1]} : vector<8x10xf32> to vector<8x6xf32>
    %58 = vector.extract_strided_slice %53 {offsets = [0, 4], sizes = [8, 6], strides = [1, 1]} : vector<8x10xf32> to vector<8x6xf32>
    %59 = tpu.concatenate %54, %55, %56, %57, %58 in 0 : vector<8x6xf32>, vector<8x6xf32>, vector<8x6xf32>, vector<8x6xf32>, vector<8x6xf32> -> vector<40x6xf32>
    %c0_22 = arith.constant 0 : index
    %c0_23 = arith.constant 0 : index
    %c0_24 = arith.constant 0 : index
    %60 = vector.load %arg8[%c0_22, %c0_23, %c0_24] : memref<1x16x40xbf16, #tpu.memory_space<vmem>>, vector<1x16x40xbf16>
    %61 = vector.shape_cast %60 : vector<1x16x40xbf16> to vector<16x40xbf16>
    %62 = arith.truncf %59 : vector<40x6xf32> to vector<40x6xbf16>
    %cst_25 = arith.constant dense<0.000000e+00> : vector<16x6xf32>
    %63 = tpu.matmul %61, %62, %cst_25 {dimension_numbers = #tpu.dot_dimension_numbers<[1], [0], [0], [1], [0, 0, 1, 1], [], []>} : vector<16x40xbf16>, vector<40x6xbf16>, vector<16x6xf32> -> vector<16x6xf32>
    %c0_26 = arith.constant 0 : index
    %c0_27 = arith.constant 0 : index
    %c0_28 = arith.constant 0 : index
    %64 = vector.load %arg9[%c0_26, %c0_27, %c0_28] : memref<1x16x1xf32, #tpu.memory_space<vmem>>, vector<1x16x1xf32>
    %65 = vector.shape_cast %64 : vector<1x16x1xf32> to vector<16x1xf32>
    %66 = vector.broadcast %65 : vector<16x1xf32> to vector<16x6xf32>
    %67 = arith.addf %63, %66 : vector<16x6xf32>
    %cst_29 = arith.constant 0.000000e+00 : f32
    %68 = vector.broadcast %cst_29 : f32 to vector<16x6xf32>
    %69 = arith.cmpf ogt, %67, %68 : vector<16x6xf32>
    %cst_30 = arith.constant 0.00999999977 : f32
    %70 = vector.broadcast %cst_30 : f32 to vector<16x6xf32>
    %71 = arith.mulf %70, %67 : vector<16x6xf32>
    %72 = arith.select %69, %67, %71 : vector<16x6xi1>, vector<16x6xf32>
    %73 = vector.extract_strided_slice %72 {offsets = [0, 0], sizes = [16, 4], strides = [1, 1]} : vector<16x6xf32> to vector<16x4xf32>
    %74 = vector.extract_strided_slice %72 {offsets = [0, 1], sizes = [16, 4], strides = [1, 1]} : vector<16x6xf32> to vector<16x4xf32>
    %75 = vector.extract_strided_slice %72 {offsets = [0, 2], sizes = [16, 4], strides = [1, 1]} : vector<16x6xf32> to vector<16x4xf32>
    %76 = tpu.concatenate %73, %74, %75 in 0 : vector<16x4xf32>, vector<16x4xf32>, vector<16x4xf32> -> vector<48x4xf32>
    %c0_31 = arith.constant 0 : index
    %c0_32 = arith.constant 0 : index
    %c0_33 = arith.constant 0 : index
    %77 = vector.load %arg10[%c0_31, %c0_32, %c0_33] : memref<1x8x48xbf16, #tpu.memory_space<vmem>>, vector<1x8x48xbf16>
    %78 = vector.shape_cast %77 : vector<1x8x48xbf16> to vector<8x48xbf16>
    %79 = arith.truncf %76 : vector<48x4xf32> to vector<48x4xbf16>
    %cst_34 = arith.constant dense<0.000000e+00> : vector<8x4xf32>
    %80 = tpu.matmul %78, %79, %cst_34 {dimension_numbers = #tpu.dot_dimension_numbers<[1], [0], [0], [1], [0, 0, 1, 1], [], []>} : vector<8x48xbf16>, vector<48x4xbf16>, vector<8x4xf32> -> vector<8x4xf32>
    %c0_35 = arith.constant 0 : index
    %c0_36 = arith.constant 0 : index
    %c0_37 = arith.constant 0 : index
    %81 = vector.load %arg11[%c0_35, %c0_36, %c0_37] : memref<1x8x1xf32, #tpu.memory_space<vmem>>, vector<1x8x1xf32>
    %82 = vector.shape_cast %81 : vector<1x8x1xf32> to vector<8x1xf32>
    %83 = vector.broadcast %82 : vector<8x1xf32> to vector<8x4xf32>
    %84 = arith.addf %80, %83 : vector<8x4xf32>
    %85 = math.tanh %84 : vector<8x4xf32>
    %86 = vector.extract_strided_slice %46 {offsets = [4, 0], sizes = [4, 4], strides = [1, 1]} : vector<8x4xf32> to vector<4x4xf32>
    %87 = vector.extract_strided_slice %85 {offsets = [0, 0], sizes = [4, 4], strides = [1, 1]} : vector<8x4xf32> to vector<4x4xf32>
    %88 = arith.addf %86, %87 : vector<4x4xf32>
    %89 = vector.extract_strided_slice %46 {offsets = [0, 0], sizes = [4, 4], strides = [1, 1]} : vector<8x4xf32> to vector<4x4xf32>
    %90 = vector.extract_strided_slice %85 {offsets = [4, 0], sizes = [4, 4], strides = [1, 1]} : vector<8x4xf32> to vector<4x4xf32>
    %91 = arith.subf %89, %90 : vector<4x4xf32>
    %92 = vector.shape_cast %88 : vector<4x4xf32> to vector<1x4x4xf32>
    %93 = vector.shape_cast %91 : vector<4x4xf32> to vector<1x4x4xf32>
    %94 = tpu.concatenate %92, %93 in 0 : vector<1x4x4xf32>, vector<1x4x4xf32> -> vector<2x4x4xf32>
    %95 = vector.shape_cast %94 : vector<2x4x4xf32> to vector<1x2x1x4x4xf32>
    %c0_38 = arith.constant 0 : index
    %c0_39 = arith.constant 0 : index
    %c0_40 = arith.constant 0 : index
    %c0_41 = arith.constant 0 : index
    %c0_42 = arith.constant 0 : index
    %96 = vector.load %arg12[%c0_38, %c0_39, %c0_40, %c0_41, %c0_42] : memref<1x2x1x4x4xf32, #tpu.memory_space<vmem>>, vector<1x2x1x4x4xf32>
    tpu.vector_store %arg12[%c0_38, %c0_39, %c0_40, %c0_41, %c0_42], %95 {strides = array<i32>} : memref<1x2x1x4x4xf32, #tpu.memory_space<vmem>>, vector<1x2x1x4x4xf32>,
    return
  }
  func.func @transform_0(%arg0: i32, %arg1: i32) -> (i32, i32, i32, i32) {
    %c0_i32 = arith.constant 0 : i32
    %c0_i32_0 = arith.constant 0 : i32
    %c0_i32_1 = arith.constant 0 : i32
    return %arg0, %arg1, %c0_i32, %c0_i32_0 : i32, i32, i32, i32
  }
  func.func @transform_1(%arg0: i32, %arg1: i32) -> (i32, i32, i32, i32) {
    %c0_i32 = arith.constant 0 : i32
    %c0_i32_0 = arith.constant 0 : i32
    %c0_i32_1 = arith.constant 0 : i32
    return %arg0, %arg1, %c0_i32, %c0_i32_0 : i32, i32, i32, i32
  }
  func.func @transform_2(%arg0: i32, %arg1: i32) -> (i32, i32, i32) {
    %c0_i32 = arith.constant 0 : i32
    %c0_i32_0 = arith.constant 0 : i32
    %c0_i32_1 = arith.constant 0 : i32
    return %arg0, %c0_i32, %c0_i32_0 : i32, i32, i32
  }
  func.func @transform_3(%arg0: i32, %arg1: i32) -> (i32, i32, i32) {
    %c0_i32 = arith.constant 0 : i32
    %c0_i32_0 = arith.constant 0 : i32
    %c0_i32_1 = arith.constant 0 : i32
    return %arg0, %c0_i32, %c0_i32_0 : i32, i32, i32
  }
  func.func @transform_4(%arg0: i32, %arg1: i32) -> (i32, i32, i32) {
    %c0_i32 = arith.constant 0 : i32
    %c0_i32_0 = arith.constant 0 : i32
    %c0_i32_1 = arith.constant 0 : i32
    return %arg0, %c0_i32, %c0_i32_0 : i32, i32, i32
  }
  func.func @transform_5(%arg0: i32, %arg1: i32) -> (i32, i32, i32) {
    %c0_i32 = arith.constant 0 : i32
    %c0_i32_0 = arith.constant 0 : i32
    %c0_i32_1 = arith.constant 0 : i32
    return %arg0, %c0_i32, %c0_i32_0 : i32, i32, i32
  }
  func.func @transform_6(%arg0: i32, %arg1: i32) -> (i32, i32, i32) {
    %c0_i32 = arith.constant 0 : i32
    %c0_i32_0 = arith.constant 0 : i32
    %c0_i32_1 = arith.constant 0 : i32
    return %arg0, %c0_i32, %c0_i32_0 : i32, i32, i32
  }
  func.func @transform_7(%arg0: i32, %arg1: i32) -> (i32, i32, i32) {
    %c0_i32 = arith.constant 0 : i32
    %c0_i32_0 = arith.constant 0 : i32
    %c0_i32_1 = arith.constant 0 : i32
    return %arg0, %c0_i32, %c0_i32_0 : i32, i32, i32
  }
  func.func @transform_8(%arg0: i32, %arg1: i32) -> (i32, i32, i32) {
    %c0_i32 = arith.constant 0 : i32
    %c0_i32_0 = arith.constant 0 : i32
    %c0_i32_1 = arith.constant 0 : i32
    return %arg0, %c0_i32, %c0_i32_0 : i32, i32, i32
  }
  func.func @transform_9(%arg0: i32, %arg1: i32) -> (i32, i32, i32) {
    %c0_i32 = arith.constant 0 : i32
    %c0_i32_0 = arith.constant 0 : i32
    %c0_i32_1 = arith.constant 0 : i32
    return %arg0, %c0_i32, %c0_i32_0 : i32, i32, i32
  }
  func.func @transform_10(%arg0: i32, %arg1: i32) -> (i32, i32, i32, i32, i32) {
    %c0_i32 = arith.constant 0 : i32
    %c0_i32_0 = arith.constant 0 : i32
    %c0_i32_1 = arith.constant 0 : i32
    %c0_i32_2 = arith.constant 0 : i32
    return %arg0, %c0_i32, %arg1, %c0_i32_0, %c0_i32_1 : i32, i32, i32, i32, i32
  }
}

</mosaic_0001>

<bundles_post_ra>
// kernel: encoder_tree_forward.2
= control target key start
LH: loop header
LB: loop body
LE: loop exit
PB: predicated region body
PF: predicated region fallthrough
CT: control target
= control target key end

     0   :  { %s1456_s13 = smov 0   ;;  %s1458_s14 = smov 0   ;;  %s1621_s0 = inlined_call_operand.vmem [shape: f32[1,2,4,8], index: 0, kind: input, shape index: {}]   ;;  %s1622_s1 = inlined_call_operand.vmem [shape: f32[1,2,4,8], index: 1, kind: input, shape index: {}]   ;;  %s1623_s2 = inlined_call_operand.vmem [shape: bf16[1,16,40], index: 2, kind: input, shape index: {}]   ;;  %s1624_s3 = inlined_call_operand.vmem [shape: f32[1,16,1], index: 3, kind: input, shape index: {}]   ;;  %s1625_s4 = inlined_call_operand.vmem [shape: bf16[1,8,48], index: 4, kind: input, shape index: {}]   ;;  %s1626_s5 = inlined_call_operand.vmem [shape: f32[1,8,1], index: 5, kind: input, shape index: {}]   ;;  %s1627_s6 = inlined_call_operand.vmem [shape: bf16[1,16,40], index: 6, kind: input, shape index: {}]   ;;  %s1628_s7 = inlined_call_operand.vmem [shape: f32[1,16,1], index: 7, kind: input, shape index: {}]   ;;  %s1629_s8 = inlined_call_operand.vmem [shape: bf16[1,8,48], index: 8, kind: input, shape index: {}]   ;;  %s1630_s9 = inlined_call_operand.vmem [shape: f32[1,8,1], index: 9, kind: input, shape index: {}]   ;;  %s1631_s10 = inlined_call_operand.vmem [shape: f32[1,2,2,4,8], index: 10, kind: output, shape index: {}]  }
   0x1   :  { %s1460_s15 = smov 0   ;;  %s1462_s16 = smov 0  }
   0x2   :  { %s1464_s17 = smov 0  }
   0x3 LB: > { %s1187_s18 = sadd.s32 4294967295, %s1390_s17   ;;  %s29_s19 = sadd.s32 1, %s1386_s16  ;;  %s1390_s17 = sphi %s1464_s17, %s20_s17   ;;  %s1386_s16 = sphi %s1462_s16, %s1636_s16   ;;  %s1382_s15 = sphi %s1460_s15, %s1635_s15   ;;  %s1378_s14 = sphi %s1458_s14, %s1634_s14   ;;  %s1374_s13 = sphi %s1456_s13, %s1633_s13  }
   0x4   : > { %p30_p0 = scmp.ge.s32.totalorder %s29_s19, 2  ;;  %s305_s20 = sadd.s32 1, %s1378_s14 }
   0x5   : > { %p315_p1 = scmp.ne.s32.totalorder %s1378_s14, %s1374_s13  ;;  %p316_p2 = scmp.eq.s32.totalorder %s1187_s18, 1 }
   0x6   : > { %s1638_s19 = smov (%p30_p0, %s29_s19), 0  ;;  %p1199_p4 = scmp.ge.s32.totalorder %s1390_s17, 1 }
   0x7   : > { %p1488_p3 = por %p316_p2, %p315_p1  ;;  %s301_s22 = ssub.s32 %s1386_s16, %s1638_s19 }
   0x8   : > { %p422_p5 = scmp.lt.s32.totalorder %s1390_s17, 3  ;;  %p303_p6 = scmp.eq.s32.totalorder %s301_s22, 0 }
   0xa   : > { %p423_p7 = pnand %p1199_p4, %p422_p5 }
   0xb   : > { %s1497_s23 = scalar_select %p303_p6, %s1378_s14, %s305_s20  }
   0xc   : > { %426 = sbr.rel (%p423_p7) target bundleno = 1727 (0x6bf), region = 60  ;;  %p508_p8 = scmp.lt.s32.totalorder (!%p423_p7), %s1382_s15, 1  ;;  %v1392_v0 = vmov (!%p423_p7), 0   ;;  %vm564_vm0 = vcmask (!%p423_p7), 1043456   ;;  %v1394_v7 = vmov (!%p423_p7), 7   ;;  %v1395_v8 = vmov (!%p423_p7), 0.0  }
   0xd   : > { %1318 = vset.pattern.permute.xlu0 (!%p423_p7), %v1392_v0  ;;  %1321 = vset.pattern.permute.xlu1 (!%p423_p7), %v1392_v0  ;;  %s1393_s12 = smov (!%p423_p7), 3   ;;  %vm582_vm1 = vcmask (!%p423_p7), 23552   ;;  %vm584_vm2 = vcmask (!%p423_p7), 89088   ;;  %vm1396_vm3 = vmmov (!%p423_p7), 0   ;;  %s1397_s18 = smov (!%p423_p7), 125   ;;  %v604_v14 = vld [vmem:[%s1624_s3] sm:$0xff] (!%p423_p7) }
   0xe   : > { %1229 = vmatprep.subr.bf16.mxu0 (!%p423_p7), %v1395_v8  ;;  %1239 = vmatprep.subr.bf16.mxu1 (!%p423_p7), %v1395_v8  ;;  %s1398_s20 = smov (!%p423_p7), 127   ;;  %s1400_s26 = smov (!%p423_p7), 124   ;;  %v605_v15 = vld [vmem:[%s1624_s3 + $0x8] sm:$0xff] (!%p423_p7)  ;;  %v1344_v24 = vld [vmem:[%s1623_s2] sm:$0xff] (!%p423_p7)   ;;  %vm621_vm4 = vcmask (!%p423_p7), 326656   ;;  %vm699_vm7 = vcmask (!%p423_p7), 392192  }
   0xf   : > { %1235 = vmatprep.mubr.msk.bf16.mxu0 (!%p423_p7), %vm1396_vm3, %v1395_v8  ;;  %1245 = vmatprep.mubr.msk.bf16.mxu1 (!%p423_p7), %vm1396_vm3, %v1395_v8  ;;  %v693_v39 = vld [vmem:[%s1626_s5] sm:$0xff] (!%p423_p7)  ;;  %vm925_vm10 = vcmask (!%p423_p7), 64516  }
  0x10   : > { %v689_v48 = vld [vmem:[%s1625_s4] sm:$0xf] (!%p423_p7) }
  0x13   : > { %s509_s24 = scalar_select %p508_p8, %s1382_s15, 1 }
  0x14   : > { %s1210_s29 = sshll.u32 (%p1488_p3), %s1382_s15, 2 }
  0x15   : > { %s1201_s25 = sshll.u32 %s509_s24, 2  ;;  %s503_s24 = sand.u32 1, %s1374_s13  }
  0x16   : > { %s513_s28 = scalar_lea.vmem %s1621_s0, %s1201_s25  ;;  %s521_s11 = scalar_lea.vmem %s1622_s1, %s1201_s25 }
  0x17   : > { %v559_v1 = vld [vmem:[%s513_s28] sm:$0xf]  ;;  %s1399_s25 = smov 126   ;;  %s1200_s27 = sshll.u32 %s503_s24, 3 }
  0x18   : > { %v560_v2 = vld [vmem:[%s521_s11] sm:$0xf]  ;;  %v567_v4 = vrot.slane %v559_v1, 4  ;;  %s505_s28 = scalar_lea.vmem [#allocation2], %s1200_s27  ;;  %s938_s30 = scalar_lea.vmem (%p1488_p3), %s1631_s10, %s1210_s29 }
  0x19   : > { %v562_v3 = vrot.slane %v560_v2, 4 }
  0x1a   : > { %v1511_v6 = vsel %vm564_vm0, %v560_v2, %v567_v4 }
  0x1b   : > { %v565_v5 = vsel %vm564_vm0, %v559_v1, %v562_v3  ;;  %v780_v1 = vld [vmem:[%s1628_s7 + $0x8] sm:$0xff] }
  0x1c   : > { %572 = vperm.xlu0 %1318, %v565_v5   ;;  %579 = vrot.lane.b32.xlu1 %v565_v5, %s1393_s12 }
  0x20   : > { %1319 = vset.pattern.permute.xlu0 %v1394_v7 }
  0x21   : > { %576 = vperm.xlu0 %1319, %v565_v5  }
  0x25   : > { %1320 = vset.pattern.permute.xlu0 %v1392_v0 }
  0x8e   : > { %v580_v10 = vpop.permute.xlu1 %579 }
  0x9b   : > { %v573_v9 = vpop.permute.xlu0 %572 }
  0x9c   : > { %v583_v11 = vsel %vm582_vm1, %v573_v9, %v580_v10 }
  0xa0   : > { %v577_v12 = vpop.permute.xlu0 %576 }
  0xa1   : > { %v585_v13 = vsel %vm584_vm2, %v583_v11, %v577_v12  ;;  %v1345_v11 = vld [vmem:[%s1627_s6] sm:$0xff]  }
  0xa2   : > { %593 = vrot.lane.b32.xlu0 %v585_v13, %s1397_s18  ;;  %587 = vrot.lane.b32.xlu1 %v585_v13, %s1398_s20 }
  0xa6   : > { %590 = vrot.lane.b32.xlu1 %v585_v13, %s1399_s25  ;;  %608 = vperm.xlu0 %1320, %v604_v14  }
  0xaa   : > { %596 = vrot.lane.b32.xlu1 %v585_v13, %s1400_s26 }
  0xae   : > { %613 = vperm.xlu1 %1321, %v605_v15  }
 0x114   : > { %v588_v16 = vpop.permute.xlu1 %587  ;;  %v594_v18 = vpop.permute.xlu0 %593 }
 0x115   : > { %v601_v17 = vpack.c.bf16 %v588_v16, %v585_v13 }
 0x117   : > { %1230 = vmatpush3.bf16.msra.mxu0 %v601_v17 }
 0x118   : > { %v591_v19 = vpop.permute.xlu1 %590  ;;  %1231 = vmatprep.subr.bf16.mxu0 %v1395_v8 }
 0x119   : > { %v602_v20 = vpack.c.bf16 %v594_v18, %v591_v19 }
 0x11b   : > { %1232 = vmatpush3.bf16.msra.mxu0 %v602_v20 }
 0x11c   : > { %v597_v21 = vpop.permute.xlu1 %596  ;;  %1233 = vmatprep.subr.bf16.mxu0 %v1395_v8 }
 0x11d   : > { %v603_v22 = vpack.c.bf16 %v597_v21, %v597_v21 }
 0x11f   : > { %v626_v23 = vsel %vm564_vm0, %v603_v22, 0 }
 0x120   : > { %1234 = vmatpush3.bf16.msra.mxu0 %v626_v23 }
 0x121   : > { %1249 = vmatprep.subr.bf16.mxu0 %v1395_v8 }
 0x123   : > { %1236 = vmatmul.mubr.msk.bf16.vlgmr.msra.gmra.mrb[0].mxu0 %vm621_vm4, %v1344_v24 }
 0x124   : > { %1255 = vmatprep.mubr.msk.bf16.mxu0 %vm1396_vm3, %v1395_v8 }
 0x125   : > { %v609_v25 = vpop.permute.xlu0 %608 }
 0x12d   : > { %v614_v27 = vpop.permute.xlu1 %613 }
 0x1f6   : > { %v662_v26 = vpop.f32.mrb[0].mxu0 }
 0x1f7   : > { %v663_v28 = vadd.f32 %v662_v26, %v609_v25  ;;  %v1237_v29 = vpop.f32.mrb[1].mxu0  ;;  %v867_v26 = vld [vmem:[%s1630_s9] sm:$0xff] }
 0x1f8   : > { %v665_v30 = vpop.f32.mrb[2].mxu0 }
 0x1f9   : > { %v671_v31 = vmul.f32 0.01, %v663_v28  ;;  %v666_v32 = vadd.f32 %v665_v30, %v614_v27  ;;  %v1238_v33 = vpop.f32.mrb[3].mxu0  ;;  %vm669_vm5 = vcmp.gt.f32.partialorder %v663_v28, 0.0 }
 0x1fb   : > { %vm670_vm6 = vcmp.gt.f32.partialorder %v666_v32, 0.0  ;;  %v672_v34 = vmul.f32 0.01, %v666_v32  ;;  %v673_v35 = vsel %vm669_vm5, %v663_v28, %v671_v31 }
 0x1fd   : > { %v674_v36 = vsel %vm670_vm6, %v666_v32, %v672_v34 }
 0x1fe   : > { %v1327_v37 = vpack.i.bf16 %v674_v36, %v673_v35  ;;  %v690_v38 = vpack.c.bf16 %v674_v36, %v673_v35  ;;  %v863_v35 = vld [vmem:[%s1629_s8] sm:$0xf] }
 0x200   : > { %1328 = vrot.lane.b32.xlu0 %v1327_v37, %s1399_s25  ;;  %1323 = vrot.lane.b32.xlu1 %v1327_v37, %s1398_s20 }
 0x201   : > { %1240 = vmatpush3.bf16.msra.mxu1 %v690_v38 }
 0x202   : > { %1241 = vmatprep.subr.bf16.mxu1 %v1395_v8 }
 0x204   : > { %696 = vperm.xlu1 %1321, %v693_v39  }
 0x208   : > { %1332 = vset.pattern.permute.xlu1 %v1394_v7 }
 0x272   : > { %v1329_v40 = vpop.permute.xlu0 %1328  ;;  %v1324_v41 = vpop.permute.xlu1 %1323 }
 0x273   : > { %v1326_v42 = vunpack.i.h.bf16 %v1324_v41  ;;  %v1325_v43 = vunpack.i.l.bf16 %v1324_v41  ;;  %v1331_v44 = vunpack.i.h.bf16 %v1329_v40  ;;  %v1330_v45 = vunpack.i.l.bf16 %v1329_v40 }
 0x275   : > { %v691_v46 = vpack.c.bf16 %v1326_v42, %v1325_v43  ;;  %v692_v47 = vpack.c.bf16 %v1331_v44, %v1330_v45 }
 0x277   : > { %1242 = vmatpush3.bf16.msra.mxu1 %v691_v46 }
 0x278   : > { %1243 = vmatprep.subr.bf16.mxu1 %v1395_v8 }
 0x27b   : > { %1244 = vmatpush3.bf16.msra.mxu1 %v692_v47 }
 0x27c   : > { %1259 = vmatprep.subr.bf16.mxu1 %v1395_v8 }
 0x27e   : > { %1246 = vmatmul.mubr.msk.bf16.vlgmr.msra.gmra.mrb[0].mxu1 %vm699_vm7, %v689_v48 }
 0x27f   : > { %1265 = vmatprep.mubr.msk.bf16.mxu1 %vm1396_vm3, %v1395_v8 }
 0x283   : > { %v697_v49 = vpop.permute.xlu1 %696 }
 0x351   : > { %v737_v50 = vpop.f32.mrb[0].mxu1 }
 0x352   : > { %v738_v51 = vadd.f32 %v737_v50, %v697_v49  ;;  %v1247_v52 = vpop.f32.mrb[1].mxu1 }
 0x353   : > { %v740_v53 = vpop.f32.mrb[2].mxu1 }
 0x354   : > { %1346 = vtanh.f32 %v738_v51  ;;  %v1248_v54 = vpop.f32.mrb[3].mxu1 }
 0x35e   : > { %v1347_v55 = vpop.eup %1346 }
 0x35f   : > { %v744_v56 = vmul.f32 1.442695, %v1347_v55 }
 0x361   : > { %1348 = vpow2.f32 %v744_v56 }
 0x36b   : > { %v1349_v57 = vpop.eup %1348 }
 0x36c   : > { %v1560_v58 = vmul.f32 %v1349_v57, %v1511_v6 }
 0x36e   : > { %753 = vperm.xlu1 %1332, %v1560_v58   ;;  %749 = vperm.xlu0 %1320, %v1560_v58  }
 0x372   : > { %756 = vrot.lane.b32.xlu0 %v1560_v58, %s1393_s12  ;;  %1333 = vset.pattern.permute.xlu1 %v1392_v0  ;;  %v779_v0 = vld [vmem:[%s1628_s7] sm:$0xff] }
 0x3ed   : > { %v750_v59 = vpop.permute.xlu0 %749  ;;  %v754_v61 = vpop.permute.xlu1 %753 }
 0x3f1   : > { %v757_v60 = vpop.permute.xlu0 %756 }
 0x3f2   : > { %v759_v62 = vsel %vm582_vm1, %v750_v59, %v757_v60 }
 0x3f3   : > { %v760_v63 = vsel %vm584_vm2, %v759_v62, %v754_v61 }
 0x3f4   : > { %765 = vrot.lane.b32.xlu0 %v760_v63, %s1399_s25  ;;  %762 = vrot.lane.b32.xlu1 %v760_v63, %s1398_s20 }
 0x3f8   : > { %771 = vrot.lane.b32.xlu0 %v760_v63, %s1400_s26  ;;  %768 = vrot.lane.b32.xlu1 %v760_v63, %s1397_s18 }
 0x3fc   : > { %788 = vperm.xlu0 %1320, %v780_v1   ;;  %783 = vperm.xlu1 %1333, %v779_v0  }
 0x466   : > { %v766_v2 = vpop.permute.xlu0 %765  ;;  %v763_v3 = vpop.permute.xlu1 %762 }
 0x467   : > { %v776_v4 = vpack.c.bf16 %v763_v3, %v760_v63 }
 0x469   : > { %1250 = vmatpush3.bf16.msra.mxu0 %v776_v4 }
 0x46a   : > { %v772_v5 = vpop.permute.xlu0 %771  ;;  %v769_v6 = vpop.permute.xlu1 %768  ;;  %1251 = vmatprep.subr.bf16.mxu0 %v1395_v8 }
 0x46b   : > { %v777_v7 = vpack.c.bf16 %v769_v6, %v766_v2  ;;  %v778_v9 = vpack.c.bf16 %v772_v5, %v772_v5 }
 0x46d   : > { %1252 = vmatpush3.bf16.msra.mxu0 %v777_v7  ;;  %v800_v10 = vsel %vm564_vm0, %v778_v9, 0 }
 0x46e   : > { %1253 = vmatprep.subr.bf16.mxu0 %v1395_v8 }
 0x471   : > { %1254 = vmatpush3.bf16.msra.mxu0 %v800_v10 }
 0x474   : > { %1256 = vmatmul.mubr.msk.bf16.vlgmr.msra.gmra.mrb[4].mxu0 %vm621_vm4, %v1345_v11 }
 0x47b   : > { %v784_v12 = vpop.permute.xlu1 %783  ;;  %v789_v16 = vpop.permute.xlu0 %788 }
 0x547   : > { %v836_v13 = vpop.f32.mrb[4].mxu0 }
 0x548   : > { %v837_v14 = vadd.f32 %v836_v13, %v784_v12  ;;  %v1257_v15 = vpop.f32.mrb[5].mxu0 }
 0x549   : > { %v839_v17 = vpop.f32.mrb[6].mxu0 }
 0x54a   : > { %v845_v18 = vmul.f32 0.01, %v837_v14  ;;  %v840_v19 = vadd.f32 %v839_v17, %v789_v16  ;;  %v1258_v20 = vpop.f32.mrb[7].mxu0  ;;  %vm843_vm8 = vcmp.gt.f32.partialorder %v837_v14, 0.0 }
 0x54c   : > { %vm844_vm9 = vcmp.gt.f32.partialorder %v840_v19, 0.0  ;;  %v846_v21 = vmul.f32 0.01, %v840_v19  ;;  %v847_v22 = vsel %vm843_vm8, %v837_v14, %v845_v18 }
 0x54e   : > { %v848_v23 = vsel %vm844_vm9, %v840_v19, %v846_v21 }
 0x54f   : > { %v864_v24 = vpack.c.bf16 %v848_v23, %v847_v22  ;;  %v1339_v25 = vpack.i.bf16 %v848_v23, %v847_v22 }
 0x551   : > { %1340 = vrot.lane.b32.xlu0 %v1339_v25, %s1399_s25  ;;  %1335 = vrot.lane.b32.xlu1 %v1339_v25, %s1398_s20 }
 0x552   : > { %1260 = vmatpush3.bf16.msra.mxu1 %v864_v24 }
 0x553   : > { %1261 = vmatprep.subr.bf16.mxu1 %v1395_v8 }
 0x555   : > { %870 = vperm.xlu1 %1333, %v867_v26  }
 0x5c3   : > { %v1341_v27 = vpop.permute.xlu0 %1340  ;;  %v1336_v28 = vpop.permute.xlu1 %1335 }
 0x5c4   : > { %v1338_v29 = vunpack.i.h.bf16 %v1336_v28  ;;  %v1337_v30 = vunpack.i.l.bf16 %v1336_v28  ;;  %v1343_v31 = vunpack.i.h.bf16 %v1341_v27  ;;  %v1342_v32 = vunpack.i.l.bf16 %v1341_v27 }
 0x5c6   : > { %v865_v33 = vpack.c.bf16 %v1338_v29, %v1337_v30  ;;  %v866_v34 = vpack.c.bf16 %v1343_v31, %v1342_v32 }
 0x5c8   : > { %1262 = vmatpush3.bf16.msra.mxu1 %v865_v33 }
 0x5c9   : > { %1263 = vmatprep.subr.bf16.mxu1 %v1395_v8 }
 0x5cc   : > { %1264 = vmatpush3.bf16.msra.mxu1 %v866_v34 }
 0x5cf   : > { %1266 = vmatmul.mubr.msk.bf16.vlgmr.msra.gmra.mrb[4].mxu1 %vm699_vm7, %v863_v35 }
 0x5d4   : > { %v871_v36 = vpop.permute.xlu1 %870 }
 0x6a2   : > { %v910_v37 = vpop.f32.mrb[4].mxu1 }
 0x6a3   : > { %v911_v38 = vadd.f32 %v910_v37, %v871_v36  ;;  %v1267_v39 = vpop.f32.mrb[5].mxu1 }
 0x6a4   : > { %v913_v40 = vpop.f32.mrb[6].mxu1 }
 0x6a5   : > { %1350 = vtanh.f32 %v911_v38  ;;  %v1268_v41 = vpop.f32.mrb[7].mxu1 }
 0x6af   : > { %v1351_v42 = vpop.eup %1350 }
 0x6b0   : > { %v918_v43 = vrot.slane %v1351_v42, 4  ;;  %934 = sbr.rel (!%p1488_p3) target bundleno = 1727 (0x6bf), region = 64 }
 0x6b2   : > { %v920_v8 = vadd.f32 %v918_v43, %v1560_v58  ;;  %v921_v44 = vsub.f32 %v1560_v58, %v918_v43 }
 0x6b4   : > { %v923_v45 = vrot.slane %v921_v44, 4  ;;  %926 = vst.msk [vmem:[%s505_s28 - $0x4] sm:$0xf0] %vm925_vm10, %v920_v8 }
 0x6b6   : > { %927 = vst.msk [vmem:[%s505_s28] sm:$0xf0] %vm925_vm10, %v923_v45 }
 0x6bb   : > { %v954_v46 = vld [vmem:[%s505_s28] sm:$0xf] }
 0x6bc   : > { %955 = vst [vmem:[%s938_s30] sm:$0xf] %v954_v46 }
 0x6bd   : > { %v956_v47 = vld [vmem:[%s505_s28 + $0x4] sm:$0xf] }
 0x6be   : > { %957 = vst [vmem:[%s938_s30 + $0x8] sm:$0xf] %v956_v47 }
 0x6bf PF: > { %s20_s17 = sadd.s32 1, %s1390_s17   ;;  %s1633_s13 = smov %s1378_s14 }
 0x6c0   : > { %p17_p9 = scmp.ge.s32.totalorder %s20_s17, 4   ;;  %s1634_s14 = smov %s1497_s23 }
 0x6c1   : > { %s1635_s15 = smov %s1386_s16  ;;  %s1636_s16 = smov %s1638_s19 }
 0x6c2   :  { %19 = sbr.rel (!%p17_p9) target bundleno = 3 (0x3), region = 158 }

// kernel: encoder_tree_forward.3
= control target key start
LH: loop header
LB: loop body
LE: loop exit
PB: predicated region body
PF: predicated region fallthrough
CT: control target
= control target key end

     0   :  { %s1687_s0 = inlined_call_operand.vmem [shape: f32[2,2,4,4], index: 0, kind: input, shape index: {}]   ;;  %s1688_s1 = inlined_call_operand.vmem [shape: f32[2,2,4,4], index: 1, kind: input, shape index: {}]   ;;  %s1689_s2 = inlined_call_operand.vmem [shape: bf16[2,16,40], index: 2, kind: input, shape index: {}]   ;;  %s1690_s3 = inlined_call_operand.vmem [shape: f32[2,16,1], index: 3, kind: input, shape index: {}]   ;;  %s1691_s4 = inlined_call_operand.vmem [shape: bf16[2,8,48], index: 4, kind: input, shape index: {}]   ;;  %s1692_s5 = inlined_call_operand.vmem [shape: f32[2,8,1], index: 5, kind: input, shape index: {}]   ;;  %s1693_s6 = inlined_call_operand.vmem [shape: bf16[2,16,40], index: 6, kind: input, shape index: {}]   ;;  %s1694_s7 = inlined_call_operand.vmem [shape: f32[2,16,1], index: 7, kind: input, shape index: {}]   ;;  %s1695_s8 = inlined_call_operand.vmem [shape: bf16[2,8,48], index: 8, kind: input, shape index: {}]   ;;  %s1696_s9 = inlined_call_operand.vmem [shape: f32[2,8,1], index: 9, kind: input, shape index: {}]   ;;  %s1697_s10 = inlined_call_operand.vmem [shape: f32[2,2,2,4,4], index: 10, kind: output, shape index: {}]  }
   0x1   :  { %1704 = sst [smem:[#allocation5_spill]] %s1687_s0 }
   0x2   :  { %1705 = sst [smem:[#allocation6_spill]] %s1688_s1 }
   0x3   :  { %s1478_s13 = smov 0   ;;  %s1480_s14 = smov 0  }
   0x4   :  { %s1482_s15 = smov 0   ;;  %s1484_s16 = smov 0  }
   0x5   :  { %s1486_s17 = smov 0   ;;  %s1488_s18 = smov 0  }
   0x6   :  { %s1490_s19 = smov 0  }
   0x7 LB: > { %s29_s20 = sadd.s32 1, %s1404_s17  ;;  %s32_s21 = sadd.s32 1, %s1408_s18  ;;  %s1412_s19 = sphi %s1490_s19, %s20_s19   ;;  %s1408_s18 = sphi %s1488_s18, %s1722_s18   ;;  %s1404_s17 = sphi %s1486_s17, %s1721_s17   ;;  %s1400_s16 = sphi %s1484_s16, %s1720_s16   ;;  %s1396_s15 = sphi %s1482_s15, %s1719_s15   ;;  %s1392_s14 = sphi %s1480_s14, %s1718_s14   ;;  %s1388_s13 = sphi %s1478_s13, %s1717_s13  }
   0x8   : > { %p30_p0 = scmp.ge.s32.totalorder %s29_s20, 2  ;;  %s1166_s22 = sadd.s32 4294967295, %s1412_s19  }
   0x9   : > { %p315_p1 = scmp.ne.s32.totalorder %s1392_s14, %s1388_s13  ;;  %p316_p2 = scmp.eq.s32.totalorder %s1166_s22, 3 }
   0xa   : > { %s1724_s20 = smov (%p30_p0, %s29_s20), 0  ;;  %s1726_s21 = smov (!%p30_p0, %s32_s21), %s1408_s18 }
   0xb   : > { %1706 = sst [smem:[#allocation3_spill]] %s1724_s20  ;;  %s301_s23 = ssub.s32 %s1404_s17, %s1724_s20 }
   0xc   : > { %p34_p3 = scmp.ge.s32.totalorder %s1726_s21, 2  ;;  %p1170_p4 = scmp.ge.s32.totalorder %s1412_s19, 1 }
   0xd   : > { %p1524_p5 = por %p316_p2, %p315_p1  ;;  %p422_p6 = scmp.lt.s32.totalorder %s1412_s19, 5 }
   0xe   : > { %s1728_s21 = smov (%p34_p3, %s1726_s21), 0  ;;  %s305_s27 = sadd.s32 1, %s1392_s14 }
   0xf   : > { %1708 = sst [smem:[#allocation4_spill]] %s1728_s21  ;;  %p423_p7 = pnand %p1170_p4, %p422_p6 }
  0x10   : > { %s300_s25 = ssub.s32 %s1408_s18, %s1728_s21  ;;  %p506_p9 = scmp.lt.s32.totalorder (!%p423_p7), %s1400_s16, 1  ;;  %v1414_v0 = vmov (!%p423_p7), 0   ;;  %vm564_vm0 = vcmask (!%p423_p7), 1043456   ;;  %v1416_v7 = vmov (!%p423_p7), 3   ;;  %v1417_v8 = vmov (!%p423_p7), 0.0  }
  0x11   : > { %s302_s26 = sor.u32 %s301_s23, %s300_s25  ;;  %426 = sbr.rel (%p423_p7) target bundleno = 1734 (0x6c6), region = 60  ;;  %1324 = vset.pattern.permute.xlu0 (!%p423_p7), %v1414_v0  ;;  %1327 = vset.pattern.permute.xlu1 (!%p423_p7), %v1414_v0  ;;  %vm582_vm1 = vcmask (!%p423_p7), 23552   ;;  %vm584_vm2 = vcmask (!%p423_p7), 56320   ;;  %vm1418_vm3 = vmmov (!%p423_p7), 0   ;;  %vm621_vm4 = vcmask (!%p423_p7), 326656  }
  0x12   : > { %p303_p8 = scmp.eq.s32.totalorder %s302_s26, 0  ;;  %p508_p10 = scmp.lt.s32.totalorder (!%p423_p7), %s1396_s15, 1  ;;  %1219 = vmatprep.subr.bf16.mxu0 (!%p423_p7), %v1417_v8  ;;  %1229 = vmatprep.subr.bf16.mxu1 (!%p423_p7), %v1417_v8  ;;  %vm699_vm7 = vcmask (!%p423_p7), 392192   ;;  %vm925_vm10 = vcmask (!%p423_p7), 31748  }
  0x13   : > { %s1709_s0 = sld [smem:[#allocation5_spill]] (!%p423_p7)  ;;  %s1710_s1 = sld [smem:[#allocation6_spill]] (!%p423_p7)  ;;  %1225 = vmatprep.mubr.msk.bf16.mxu0 (!%p423_p7), %vm1418_vm3, %v1417_v8  ;;  %1235 = vmatprep.mubr.msk.bf16.mxu1 (!%p423_p7), %vm1418_vm3, %v1417_v8 }
  0x14   : > { %s1535_s28 = scalar_select %p303_p8, %s1392_s14, %s305_s27  }
  0x15   : > { %s1420_s23 = smov (!%p423_p7), 127  }
  0x18   : > { %s1542_s29 = scalar_select %p506_p9, %s1400_s16, 1 }
  0x19   : > { %s509_s30 = scalar_select %p508_p10, %s1396_s15, 1 }
  0x1a   : > { %s1172_s11 = sshll.u32 %s1542_s29, 1  ;;  %s1200_s25 = sshll.u32 %s1542_s29, 4 }
  0x1b   : > { %s511_s12 = sadd.s32 %s1172_s11, %s509_s30  ;;  %s1700_s30 = smov 3  }
  0x1c   : > { %s1173_s22 = sshll.u32 %s511_s12, 2  ;;  %s531_s21 = scalar_lea.vmem %s1690_s3, %s1200_s25 }
  0x1d   : > { %s513_s26 = scalar_lea.vmem %s1709_s0, %s1173_s22  ;;  %s521_s20 = scalar_lea.vmem %s1710_s1, %s1173_s22  ;;  %v604_v14 = vld [vmem:[%s531_s21] sm:$0xff]  ;;  %v605_v15 = vld [vmem:[%s531_s21 + $0x8] sm:$0xff] }
  0x1e   : > { %v559_v1 = vld [vmem:[%s513_s26] sm:$0xf]  ;;  %s1702_s22 = smov 125   ;;  %s1421_s11 = smov 126  }
  0x1f   : > { %v560_v2 = vld [vmem:[%s521_s20] sm:$0xf]  ;;  %v567_v4 = vrot.slane %v559_v1, 4  ;;  %s1562_s20 = sshll.u32 %s1542_s29, 3  ;;  %s1701_s27 = sshll.u32 %s1542_s29, 2 }
  0x20   : > { %v562_v3 = vrot.slane %v560_v2, 4  ;;  %s526_s12 = scalar_lea.vmem %s1689_s2, %s1562_s20  ;;  %s539_s26 = scalar_lea.vmem %s1692_s5, %s1562_s20 }
  0x21   : > { %v1554_v6 = vsel %vm564_vm0, %v560_v2, %v567_v4  ;;  %v1350_v24 = vld [vmem:[%s526_s12] sm:$0xff]   ;;  %s1711_s12 = smov 3   ;;  %s1712_s0 = smov 124  }
  0x22   : > { %v565_v5 = vsel %vm564_vm0, %v559_v1, %v562_v3  ;;  %v693_v39 = vld [vmem:[%s539_s26] sm:$0xff]  ;;  %s535_s26 = scalar_lea.vmem %s1691_s4, %s1701_s27  ;;  %s544_s27 = scalar_lea.vmem %s1693_s6, %s1562_s20 }
  0x23   : > { %572 = vperm.xlu0 %1324, %v565_v5   ;;  %579 = vrot.lane.b32.xlu1 %v565_v5, %s1700_s30  ;;  %s1703_s30 = smov 124   ;;  %v689_v48 = vld [vmem:[%s535_s26] sm:$0xf]  ;;  %s1713_s1 = smov 125  }
  0x24   : > { %s1195_s21 = sshll.u32 (%p1524_p5), %s1400_s16, 2 }
  0x25   : > { %s936_s26 = sadd.s32 (%p1524_p5), %s1396_s15, %s1195_s21 }
  0x27   : > { %1325 = vset.pattern.permute.xlu0 %v1416_v7 }
  0x28   : > { %576 = vperm.xlu0 %1325, %v565_v5  }
  0x2c   : > { %1326 = vset.pattern.permute.xlu0 %v1414_v0 }
  0x95   : > { %v580_v10 = vpop.permute.xlu1 %579 }
  0xa2   : > { %v573_v9 = vpop.permute.xlu0 %572 }
  0xa3   : > { %v583_v11 = vsel %vm582_vm1, %v573_v9, %v580_v10 }
  0xa7   : > { %v577_v12 = vpop.permute.xlu0 %576 }
  0xa8   : > { %v585_v13 = vsel %vm584_vm2, %v583_v11, %v577_v12  ;;  %v1351_v11 = vld [vmem:[%s544_s27] sm:$0xff]  }
  0xa9   : > { %593 = vrot.lane.b32.xlu0 %v585_v13, %s1702_s22  ;;  %587 = vrot.lane.b32.xlu1 %v585_v13, %s1420_s23  ;;  %s1714_s22 = sshll.u32 %s1542_s29, 2 }
  0xad   : > { %590 = vrot.lane.b32.xlu1 %v585_v13, %s1421_s11  ;;  %608 = vperm.xlu0 %1326, %v604_v14  }
  0xb1   : > { %596 = vrot.lane.b32.xlu1 %v585_v13, %s1703_s30  ;;  %s549_s30 = scalar_lea.vmem %s1694_s7, %s1200_s25 }
  0xb2   : > { %v779_v1 = vld [vmem:[%s549_s30] sm:$0xff] }
  0xb5   : > { %613 = vperm.xlu1 %1327, %v605_v15  }
 0x11b   : > { %v588_v16 = vpop.permute.xlu1 %587  ;;  %v594_v18 = vpop.permute.xlu0 %593 }
 0x11c   : > { %v601_v17 = vpack.c.bf16 %v588_v16, %v585_v13 }
 0x11e   : > { %1220 = vmatpush3.bf16.msra.mxu0 %v601_v17 }
 0x11f   : > { %v591_v19 = vpop.permute.xlu1 %590  ;;  %1221 = vmatprep.subr.bf16.mxu0 %v1417_v8 }
 0x120   : > { %v602_v20 = vpack.c.bf16 %v594_v18, %v591_v19 }
 0x122   : > { %1222 = vmatpush3.bf16.msra.mxu0 %v602_v20 }
 0x123   : > { %v597_v21 = vpop.permute.xlu1 %596  ;;  %1223 = vmatprep.subr.bf16.mxu0 %v1417_v8 }
 0x124   : > { %v603_v22 = vpack.c.bf16 %v597_v21, %v597_v21 }
 0x126   : > { %v626_v23 = vsel %vm564_vm0, %v603_v22, 0 }
 0x127   : > { %1224 = vmatpush3.bf16.msra.mxu0 %v626_v23 }
 0x128   : > { %1239 = vmatprep.subr.bf16.mxu0 %v1417_v8 }
 0x12a   : > { %1226 = vmatmul.mubr.msk.bf16.vlgmr.msra.gmra.mrb[0].mxu0 %vm621_vm4, %v1350_v24 }
 0x12b   : > { %1245 = vmatprep.mubr.msk.bf16.mxu0 %vm1418_vm3, %v1417_v8 }
 0x12c   : > { %v609_v25 = vpop.permute.xlu0 %608 }
 0x134   : > { %v614_v27 = vpop.permute.xlu1 %613 }
 0x1fd   : > { %v662_v26 = vpop.f32.mrb[0].mxu0 }
 0x1fe   : > { %v663_v28 = vadd.f32 %v662_v26, %v609_v25  ;;  %v1227_v29 = vpop.f32.mrb[1].mxu0 }
 0x1ff   : > { %v665_v30 = vpop.f32.mrb[2].mxu0 }
 0x200   : > { %v671_v31 = vmul.f32 0.01, %v663_v28  ;;  %v666_v32 = vadd.f32 %v665_v30, %v614_v27  ;;  %v1228_v33 = vpop.f32.mrb[3].mxu0  ;;  %vm669_vm5 = vcmp.gt.f32.partialorder %v663_v28, 0.0 }
 0x202   : > { %vm670_vm6 = vcmp.gt.f32.partialorder %v666_v32, 0.0  ;;  %v672_v34 = vmul.f32 0.01, %v666_v32  ;;  %v673_v35 = vsel %vm669_vm5, %v663_v28, %v671_v31 }
 0x204   : > { %v674_v36 = vsel %vm670_vm6, %v666_v32, %v672_v34 }
 0x205   : > { %v1333_v37 = vpack.i.bf16 %v674_v36, %v673_v35  ;;  %v690_v38 = vpack.c.bf16 %v674_v36, %v673_v35 }
 0x207   : > { %1334 = vrot.lane.b32.xlu0 %v1333_v37, %s1421_s11  ;;  %1329 = vrot.lane.b32.xlu1 %v1333_v37, %s1420_s23 }
 0x208   : > { %1230 = vmatpush3.bf16.msra.mxu1 %v690_v38 }
 0x209   : > { %1231 = vmatprep.subr.bf16.mxu1 %v1417_v8 }
 0x20b   : > { %696 = vperm.xlu1 %1327, %v693_v39  }
 0x20f   : > { %1338 = vset.pattern.permute.xlu1 %v1416_v7 }
 0x279   : > { %v1335_v40 = vpop.permute.xlu0 %1334  ;;  %v1330_v41 = vpop.permute.xlu1 %1329 }
 0x27a   : > { %v1332_v42 = vunpack.i.h.bf16 %v1330_v41  ;;  %v1331_v43 = vunpack.i.l.bf16 %v1330_v41  ;;  %v1337_v44 = vunpack.i.h.bf16 %v1335_v40  ;;  %v1336_v45 = vunpack.i.l.bf16 %v1335_v40 }
 0x27c   : > { %v691_v46 = vpack.c.bf16 %v1332_v42, %v1331_v43  ;;  %v692_v47 = vpack.c.bf16 %v1337_v44, %v1336_v45 }
 0x27e   : > { %1232 = vmatpush3.bf16.msra.mxu1 %v691_v46 }
 0x27f   : > { %1233 = vmatprep.subr.bf16.mxu1 %v1417_v8 }
 0x282   : > { %1234 = vmatpush3.bf16.msra.mxu1 %v692_v47 }
 0x283   : > { %1249 = vmatprep.subr.bf16.mxu1 %v1417_v8 }
 0x285   : > { %1236 = vmatmul.mubr.msk.bf16.vlgmr.msra.gmra.mrb[0].mxu1 %vm699_vm7, %v689_v48 }
 0x286   : > { %1255 = vmatprep.mubr.msk.bf16.mxu1 %vm1418_vm3, %v1417_v8 }
 0x28a   : > { %v697_v49 = vpop.permute.xlu1 %696 }
 0x358   : > { %v737_v50 = vpop.f32.mrb[0].mxu1 }
 0x359   : > { %v738_v51 = vadd.f32 %v737_v50, %v697_v49  ;;  %v1237_v52 = vpop.f32.mrb[1].mxu1 }
 0x35a   : > { %v740_v53 = vpop.f32.mrb[2].mxu1 }
 0x35b   : > { %1352 = vtanh.f32 %v738_v51  ;;  %v1238_v54 = vpop.f32.mrb[3].mxu1 }
 0x365   : > { %v1353_v55 = vpop.eup %1352 }
 0x366   : > { %v744_v56 = vmul.f32 1.442695, %v1353_v55 }
 0x368   : > { %1354 = vpow2.f32 %v744_v56 }
 0x372   : > { %v1355_v57 = vpop.eup %1354 }
 0x373   : > { %v1616_v58 = vmul.f32 %v1355_v57, %v1554_v6 }
 0x375   : > { %753 = vperm.xlu1 %1338, %v1616_v58   ;;  %749 = vperm.xlu0 %1326, %v1616_v58  }
 0x379   : > { %756 = vrot.lane.b32.xlu0 %v1616_v58, %s1711_s12  ;;  %1339 = vset.pattern.permute.xlu1 %v1414_v0  ;;  %v780_v0 = vld [vmem:[%s549_s30 + $0x8] sm:$0xff]  ;;  %s557_s30 = scalar_lea.vmem %s1696_s9, %s1562_s20 }
 0x37a   : > { %v867_v26 = vld [vmem:[%s557_s30] sm:$0xff] }
 0x3f4   : > { %v750_v59 = vpop.permute.xlu0 %749  ;;  %v754_v61 = vpop.permute.xlu1 %753 }
 0x3f8   : > { %v757_v60 = vpop.permute.xlu0 %756 }
 0x3f9   : > { %v759_v62 = vsel %vm582_vm1, %v750_v59, %v757_v60 }
 0x3fa   : > { %v760_v63 = vsel %vm584_vm2, %v759_v62, %v754_v61 }
 0x3fb   : > { %765 = vrot.lane.b32.xlu0 %v760_v63, %s1421_s11  ;;  %762 = vrot.lane.b32.xlu1 %v760_v63, %s1420_s23 }
 0x3ff   : > { %771 = vrot.lane.b32.xlu0 %v760_v63, %s1712_s0  ;;  %768 = vrot.lane.b32.xlu1 %v760_v63, %s1713_s1 }
 0x403   : > { %788 = vperm.xlu0 %1326, %v780_v0   ;;  %783 = vperm.xlu1 %1339, %v779_v1  }
 0x46d   : > { %v766_v2 = vpop.permute.xlu0 %765  ;;  %v763_v3 = vpop.permute.xlu1 %762 }
 0x46e   : > { %v776_v4 = vpack.c.bf16 %v763_v3, %v760_v63 }
 0x470   : > { %1240 = vmatpush3.bf16.msra.mxu0 %v776_v4 }
 0x471   : > { %v772_v5 = vpop.permute.xlu0 %771  ;;  %v769_v6 = vpop.permute.xlu1 %768  ;;  %1241 = vmatprep.subr.bf16.mxu0 %v1417_v8 }
 0x472   : > { %v777_v7 = vpack.c.bf16 %v769_v6, %v766_v2  ;;  %v778_v9 = vpack.c.bf16 %v772_v5, %v772_v5 }
 0x474   : > { %1242 = vmatpush3.bf16.msra.mxu0 %v777_v7  ;;  %v800_v10 = vsel %vm564_vm0, %v778_v9, 0 }
 0x475   : > { %1243 = vmatprep.subr.bf16.mxu0 %v1417_v8 }
 0x478   : > { %1244 = vmatpush3.bf16.msra.mxu0 %v800_v10 }
 0x47b   : > { %1246 = vmatmul.mubr.msk.bf16.vlgmr.msra.gmra.mrb[4].mxu0 %vm621_vm4, %v1351_v11 }
 0x482   : > { %v784_v12 = vpop.permute.xlu1 %783  ;;  %v789_v16 = vpop.permute.xlu0 %788 }
 0x54e   : > { %v836_v13 = vpop.f32.mrb[4].mxu0 }
 0x54f   : > { %v837_v14 = vadd.f32 %v836_v13, %v784_v12  ;;  %v1247_v15 = vpop.f32.mrb[5].mxu0 }
 0x550   : > { %v839_v17 = vpop.f32.mrb[6].mxu0 }
 0x551   : > { %v845_v18 = vmul.f32 0.01, %v837_v14  ;;  %v840_v19 = vadd.f32 %v839_v17, %v789_v16  ;;  %v1248_v20 = vpop.f32.mrb[7].mxu0  ;;  %vm843_vm8 = vcmp.gt.f32.partialorder %v837_v14, 0.0 }
 0x553   : > { %vm844_vm9 = vcmp.gt.f32.partialorder %v840_v19, 0.0  ;;  %v846_v21 = vmul.f32 0.01, %v840_v19  ;;  %v847_v22 = vsel %vm843_vm8, %v837_v14, %v845_v18 }
 0x555   : > { %v848_v23 = vsel %vm844_vm9, %v840_v19, %v846_v21 }
 0x556   : > { %v864_v24 = vpack.c.bf16 %v848_v23, %v847_v22  ;;  %v1345_v25 = vpack.i.bf16 %v848_v23, %v847_v22 }
 0x558   : > { %1346 = vrot.lane.b32.xlu0 %v1345_v25, %s1421_s11  ;;  %1341 = vrot.lane.b32.xlu1 %v1345_v25, %s1420_s23  ;;  %s553_s11 = scalar_lea.vmem %s1695_s8, %s1714_s22  ;;  %s503_s23 = sand.u32 1, %s1388_s13  }
 0x559   : > { %1250 = vmatpush3.bf16.msra.mxu1 %v864_v24  ;;  %v863_v35 = vld [vmem:[%s553_s11] sm:$0xf]  ;;  %s1171_s29 = sshll.u32 %s503_s23, 3  ;;  %s1196_s13 = sshll.u32 (%p1524_p5), %s936_s26, 2 }
 0x55a   : > { %1251 = vmatprep.subr.bf16.mxu1 %v1417_v8  ;;  %s505_s27 = scalar_lea.vmem [#allocation2], %s1171_s29  ;;  %s938_s1 = scalar_lea.vmem (%p1524_p5), %s1697_s10, %s1196_s13 }
 0x55c   : > { %870 = vperm.xlu1 %1339, %v867_v26  }
 0x5ca   : > { %v1347_v27 = vpop.permute.xlu0 %1346  ;;  %v1342_v28 = vpop.permute.xlu1 %1341 }
 0x5cb   : > { %v1344_v29 = vunpack.i.h.bf16 %v1342_v28  ;;  %v1343_v30 = vunpack.i.l.bf16 %v1342_v28  ;;  %v1349_v31 = vunpack.i.h.bf16 %v1347_v27  ;;  %v1348_v32 = vunpack.i.l.bf16 %v1347_v27 }
 0x5cd   : > { %v865_v33 = vpack.c.bf16 %v1344_v29, %v1343_v30  ;;  %v866_v34 = vpack.c.bf16 %v1349_v31, %v1348_v32 }
 0x5cf   : > { %1252 = vmatpush3.bf16.msra.mxu1 %v865_v33 }
 0x5d0   : > { %1253 = vmatprep.subr.bf16.mxu1 %v1417_v8 }
 0x5d3   : > { %1254 = vmatpush3.bf16.msra.mxu1 %v866_v34 }
 0x5d6   : > { %1256 = vmatmul.mubr.msk.bf16.vlgmr.msra.gmra.mrb[4].mxu1 %vm699_vm7, %v863_v35 }
 0x5db   : > { %v871_v36 = vpop.permute.xlu1 %870 }
 0x6a9   : > { %v910_v37 = vpop.f32.mrb[4].mxu1 }
 0x6aa   : > { %v911_v38 = vadd.f32 %v910_v37, %v871_v36  ;;  %v1257_v39 = vpop.f32.mrb[5].mxu1 }
 0x6ab   : > { %v913_v40 = vpop.f32.mrb[6].mxu1 }
 0x6ac   : > { %1356 = vtanh.f32 %v911_v38  ;;  %v1258_v41 = vpop.f32.mrb[7].mxu1 }
 0x6b6   : > { %v1357_v42 = vpop.eup %1356 }
 0x6b7   : > { %v918_v43 = vrot.slane %v1357_v42, 4  ;;  %934 = sbr.rel (!%p1524_p5) target bundleno = 1734 (0x6c6), region = 64 }
 0x6b9   : > { %v920_v44 = vadd.f32 %v918_v43, %v1616_v58  ;;  %v921_v8 = vsub.f32 %v1616_v58, %v918_v43 }
 0x6bb   : > { %v923_v45 = vrot.slane %v921_v8, 4  ;;  %926 = vst.msk [vmem:[%s505_s27 - $0x4] sm:$0xf0] %vm925_vm10, %v920_v44 }
 0x6bd   : > { %927 = vst.msk [vmem:[%s505_s27] sm:$0xf0] %vm925_vm10, %v923_v45 }
 0x6c2   : > { %v954_v46 = vld [vmem:[%s505_s27] sm:$0xf] }
 0x6c3   : > { %955 = vst [vmem:[%s938_s1] sm:$0xf] %v954_v46 }
 0x6c4   : > { %v956_v47 = vld [vmem:[%s505_s27 + $0x4] sm:$0xf] }
 0x6c5   : > { %957 = vst [vmem:[%s938_s1 + $0x8] sm:$0xf] %v956_v47 }
 0x6c6 PF: > { %s20_s19 = sadd.s32 1, %s1412_s19   ;;  %s1715_s24 = sld [smem:[#allocation3_spill]] }
 0x6c7   : > { %p17_p11 = scmp.ge.s32.totalorder %s20_s19, 6   ;;  %s1716_s30 = sld [smem:[#allocation4_spill]] }
 0x6c8   : > { %s1717_s13 = smov %s1392_s14  ;;  %s1718_s14 = smov %s1535_s28 }
 0x6c9   : > { %s1719_s15 = smov %s1404_s17  ;;  %s1720_s16 = smov %s1408_s18 }
 0x6ca   :  { %19 = sbr.rel (!%p17_p11) target bundleno = 7 (0x7), region = 158 }
 0x6cc   : > { %s1721_s17 = smov %s1715_s24 }
 0x6cd   : > { %s1722_s18 = smov %s1716_s30 }

</bundles_post_ra>
